<compile_context>
chip_gen: v7x
topology: tpu7x:2x2x1
jax: 0.10.0
libtpu: 0.0.40
codegen_flags: <defaults>
</compile_context>

<pallas_src>
import functools

import jax
import jax.numpy as jnp
import numpy as np
from jax.experimental import pallas as pl
from jax.experimental.pallas import tpu as pltpu


# ----------------------------------------------------------------------------
# Pallas kernel: ALL GNN iterations of GIN_VCG fused into one kernel.
# ----------------------------------------------------------------------------
def gin_vcg_fused_kernel(
    v_emb_ref, c_emb_ref,      # (V, D) f32, (C, D) f32
    adj_ref, adjt_ref,         # (2, C, V) bf16 [pos, neg], (2, V, C) bf16
    w_sq_ref,                  # (10, D, D)  bf16  packed square weights
    w_wide_ref,                # (2, 3D, D)  bf16  packed update first-layer weights
    b_ref,                     # (12, 1, D)  f32   packed biases
    v_out_ref, c_out_ref,      # (n_iter, V, D) f32, (n_iter, C, D) f32
    *, n_iterations,
):
    f32, bf16 = jnp.float32, jnp.bfloat16

    def mlp2(x, w1, b1, w2, b2):
        # 2-layer MLP (Linear -> relu -> Linear); bf16 MXU operands, f32 accumulate.
        h = jnp.dot(x.astype(bf16), w1, preferred_element_type=f32) + b1
        h = jnp.maximum(h, 0.0)
        return jnp.dot(h.astype(bf16), w2, preferred_element_type=f32) + b2

    v = v_emb_ref[...]
    c = c_emb_ref[...]

    # Static (unrolled) loop: weights stay resident in VMEM across iterations.
    for it in range(n_iterations):
        # --- message MLPs (packed-weight indices) ---
        p_v2c = mlp2(v, w_sq_ref[0], b_ref[0], w_sq_ref[1], b_ref[1])
        n_v2c = mlp2(v, w_sq_ref[2], b_ref[2], w_sq_ref[3], b_ref[3])
        p_c2v = mlp2(c, w_sq_ref[4], b_ref[4], w_sq_ref[5], b_ref[5])
        n_c2v = mlp2(c, w_sq_ref[6], b_ref[6], w_sq_ref[7], b_ref[7])

        # --- scatter_sum(gather(msg)) over pos/neg edges == dense adjacency matmul ---
        p_v2c_aggr = jnp.dot(adj_ref[0], p_v2c.astype(bf16), preferred_element_type=f32)
        n_v2c_aggr = jnp.dot(adj_ref[1], n_v2c.astype(bf16), preferred_element_type=f32)
        p_c2v_aggr = jnp.dot(adjt_ref[0], p_c2v.astype(bf16), preferred_element_type=f32)
        n_c2v_aggr = jnp.dot(adjt_ref[1], n_c2v.astype(bf16), preferred_element_type=f32)

        # --- c_update / v_update: 2-layer MLP on concat; single wide-K first matmul ---
        c = mlp2(jnp.concatenate([c, p_v2c_aggr, n_v2c_aggr], axis=1),
                 w_wide_ref[0], b_ref[8], w_sq_ref[8], b_ref[9])
        v = mlp2(jnp.concatenate([v, p_c2v_aggr, n_c2v_aggr], axis=1),
                 w_wide_ref[1], b_ref[10], w_sq_ref[9], b_ref[11])

        v_out_ref[it] = v
        c_out_ref[it] = c


# ----------------------------------------------------------------------------
# Jitted core: builds dense adjacency (glue), packs params, calls the kernel.
# ----------------------------------------------------------------------------
@functools.partial(jax.jit, static_argnums=(0, 1, 9))
def _gin_vcg_core(v_size, c_size, v_edge_index, c_edge_index, p_edge_index,
                  n_edge_index, v_emb, c_emb, params, n_iterations):
    f32, bf16 = jnp.float32, jnp.bfloat16
    V, D = v_emb.shape
    C = c_emb.shape[0]

    # Dense positive / negative variable-clause adjacency (edge multiplicity kept).
    vp = v_edge_index[p_edge_index]
    cp = c_edge_index[p_edge_index]
    vn = v_edge_index[n_edge_index]
    cn = c_edge_index[n_edge_index]
    a_p = jnp.zeros((c_size, v_size), f32).at[cp, vp].add(1.0)
    a_n = jnp.zeros((c_size, v_size), f32).at[cn, vn].add(1.0)
    adj = jnp.stack([a_p, a_n]).astype(bf16)            # (2, C, V), exact small ints
    adjt = jnp.stack([a_p.T, a_n.T]).astype(bf16)       # (2, V, C)

    # Pack parameters into 3 slabs.
    (w1_pv2c, b1_pv2c, w2_pv2c, b2_pv2c) = params["p_v2c"]
    (w1_nv2c, b1_nv2c, w2_nv2c, b2_nv2c) = params["n_v2c"]
    (w1_pc2v, b1_pc2v, w2_pc2v, b2_pc2v) = params["p_c2v"]
    (w1_nc2v, b1_nc2v, w2_nc2v, b2_nc2v) = params["n_c2v"]
    (wc1, bc1, wc2, bc2) = params["c_update"]
    (wv1, bv1, wv2, bv2) = params["v_update"]

    w_sq = jnp.stack([w1_pv2c, w2_pv2c, w1_nv2c, w2_nv2c,
                      w1_pc2v, w2_pc2v, w1_nc2v, w2_nc2v,
                      wc2, wv2]).astype(bf16)                         # (10, D, D)
    w_wide = jnp.stack([wc1, wv1]).astype(bf16)                       # (2, 3D, D)
    b_all = jnp.stack([b1_pv2c, b2_pv2c, b1_nv2c, b2_nv2c,
                       b1_pc2v, b2_pc2v, b1_nc2v, b2_nc2v,
                       bc1, bc2, bv1, bv2])[:, None, :].astype(f32)   # (12, 1, D)

    # Advisory cost estimate for XLA scheduling.
    flops_iter = (
        2 * (2 * V * D * D) * 2        # two v-side message MLPs, 2 layers each
        + 2 * (2 * C * D * D) * 2      # two c-side message MLPs
        + 4 * (2 * C * V * D)          # four adjacency aggregations
        + (2 * C * 3 * D * D + 2 * C * D * D)   # c_update MLP
        + (2 * V * 3 * D * D + 2 * V * D * D)   # v_update MLP
    )
    inputs = (v_emb, c_emb, adj, adjt, w_sq, w_wide, b_all)
    bytes_accessed = sum(int(np.prod(x.shape)) * x.dtype.itemsize for x in inputs)
    bytes_accessed += n_iterations * (V + C) * D * 4   # outputs

    kernel = functools.partial(gin_vcg_fused_kernel, n_iterations=n_iterations)
    v_out, c_out = pl.pallas_call(
        kernel,
        out_shape=(
            jax.ShapeDtypeStruct((n_iterations, V, D), f32),
            jax.ShapeDtypeStruct((n_iterations, C, D), f32),
        ),
        in_specs=[pl.BlockSpec(memory_space=pltpu.MemorySpace.VMEM)
                  for _ in range(len(inputs))],
        out_specs=(pl.BlockSpec(memory_space=pltpu.MemorySpace.VMEM),
                   pl.BlockSpec(memory_space=pltpu.MemorySpace.VMEM)),
        cost_estimate=pl.CostEstimate(flops=int(n_iterations * flops_iter),
                                      transcendentals=0,
                                      bytes_accessed=int(bytes_accessed)),
    )(*inputs)
    return v_out, c_out


def gin_vcg_forward(v_size, c_size, v_edge_index, c_edge_index, p_edge_index,
                    n_edge_index, v_emb, c_emb, params, n_iterations):
    """Mirrors GIN_VCG.forward: returns ([v_emb_0..n_iter], [c_emb_0..n_iter])."""
    v_out, c_out = _gin_vcg_core(v_size, c_size, v_edge_index, c_edge_index,
                                 p_edge_index, n_edge_index, v_emb, c_emb,
                                 params, n_iterations)
    v_embs = [v_emb] + [v_out[i] for i in range(n_iterations)]
    c_embs = [c_emb] + [c_out[i] for i in range(n_iterations)]
    return v_embs, c_embs


# ----------------------------------------------------------------------------
# Pure-JAX reference with the original gather / scatter_sum semantics.
# (Mirrors the kernel's bf16 matmul-operand cast points so the check is tight.)
# ----------------------------------------------------------------------------
def gin_vcg_reference(v_size, c_size, v_edge_index, c_edge_index, p_edge_index,
                      n_edge_index, v_emb, c_emb, params, n_iterations):
    f32, bf16 = jnp.float32, jnp.bfloat16
    D = v_emb.shape[1]

    def mlp2(x, w1, b1, w2, b2):
        h = jnp.dot(x.astype(bf16), w1.astype(bf16), preferred_element_type=f32) + b1
        h = jnp.maximum(h, 0.0)
        return jnp.dot(h.astype(bf16), w2.astype(bf16), preferred_element_type=f32) + b2

    vp = v_edge_index[p_edge_index]
    cp = c_edge_index[p_edge_index]
    vn = v_edge_index[n_edge_index]
    cn = c_edge_index[n_edge_index]

    def aggr(feat, src_idx, dst_idx, dst_size):
        msg = feat[src_idx].astype(bf16).astype(f32)   # mirror kernel bf16 operand
        return jnp.zeros((dst_size, D), f32).at[dst_idx].add(msg)

    v_embs, c_embs = [v_emb], [c_emb]
    for _ in range(n_iterations):
        p_v2c_aggr = aggr(mlp2(v_emb, *params["p_v2c"]), vp, cp, c_size)
        n_v2c_aggr = aggr(mlp2(v_emb, *params["n_v2c"]), vn, cn, c_size)
        p_c2v_aggr = aggr(mlp2(c_emb, *params["p_c2v"]), cp, vp, v_size)
        n_c2v_aggr = aggr(mlp2(c_emb, *params["n_c2v"]), cn, vn, v_size)
        c_emb = mlp2(jnp.concatenate([c_emb, p_v2c_aggr, n_v2c_aggr], axis=1),
                     *params["c_update"])
        c_embs.append(c_emb)
        v_emb = mlp2(jnp.concatenate([v_emb, p_c2v_aggr, n_c2v_aggr], axis=1),
                     *params["v_update"])
        v_embs.append(v_emb)
    return v_embs, c_embs


# ----------------------------------------------------------------------------
if __name__ == "__main__":
    key = jax.random.PRNGKey(0)
    DIM = 128       # opts.dim
    N_ITER = 2      # opts.n_iterations  (n_mlp_layers=2, activation=relu)
    V_SIZE = 16     # number of variables
    C_SIZE = 8      # number of clauses
    N_EDGES = 48    # variable-clause occurrences (half positive, half negative)

    keys = jax.random.split(key, 12)

    def lin_init(k, fan_in, shape):
        bound = 1.0 / np.sqrt(fan_in)
        return jax.random.uniform(k, shape, jnp.float32, -bound, bound)

    def make_mlp(k, in_dim, hidden_dim, out_dim):
        k1, k2, k3, k4 = jax.random.split(k, 4)
        return (lin_init(k1, in_dim, (in_dim, hidden_dim)),
                lin_init(k2, in_dim, (hidden_dim,)),
                lin_init(k3, hidden_dim, (hidden_dim, out_dim)),
                lin_init(k4, hidden_dim, (out_dim,)))

    params = {
        "p_v2c": make_mlp(keys[0], DIM, DIM, DIM),
        "n_v2c": make_mlp(keys[1], DIM, DIM, DIM),
        "p_c2v": make_mlp(keys[2], DIM, DIM, DIM),
        "n_c2v": make_mlp(keys[3], DIM, DIM, DIM),
        "c_update": make_mlp(keys[4], 3 * DIM, DIM, DIM),
        "v_update": make_mlp(keys[5], 3 * DIM, DIM, DIM),
    }

    # graph: random variable-clause edges; first half positive, second half negative
    v_edge_index = jax.random.randint(keys[6], (N_EDGES,), 0, V_SIZE, jnp.int32)
    c_edge_index = jax.random.randint(keys[7], (N_EDGES,), 0, C_SIZE, jnp.int32)
    p_edge_index = jnp.arange(0, N_EDGES // 2, dtype=jnp.int32)
    n_edge_index = jnp.arange(N_EDGES // 2, N_EDGES, dtype=jnp.int32)

    v_emb = jax.random.normal(keys[8], (V_SIZE, DIM), jnp.float32)
    c_emb = jax.random.normal(keys[9], (C_SIZE, DIM), jnp.float32)

    # run fused Pallas forward
    v_embs, c_embs = gin_vcg_forward(V_SIZE, C_SIZE, v_edge_index, c_edge_index,
                                     p_edge_index, n_edge_index, v_emb, c_emb,
                                     params, N_ITER)
    jax.block_until_ready(v_embs[-1])
    jax.block_until_ready(c_embs[-1])

    # correctness check against gather/scatter reference (bf16-matched cast points)
    v_ref, c_ref = gin_vcg_reference(V_SIZE, C_SIZE, v_edge_index, c_edge_index,
                                     p_edge_index, n_edge_index, v_emb, c_emb,
                                     params, N_ITER)
    for a, b in zip(v_embs, v_ref):
        np.testing.assert_allclose(np.asarray(a), np.asarray(b), rtol=5e-3, atol=5e-3)
    for a, b in zip(c_embs, c_ref):
        np.testing.assert_allclose(np.asarray(a), np.asarray(b), rtol=5e-3, atol=5e-3)

    print("KERNEL_OK")
</pallas_src>

<mosaic_0001>
module attributes {stable_mosaic.version = 11 : i64} {
  func.func @gin_vcg_fused_kernel(%arg0: memref<16x128xf32, #tpu.memory_space<vmem>>, %arg1: memref<8x128xf32, #tpu.memory_space<vmem>>, %arg2: memref<2x8x16xbf16, #tpu.memory_space<vmem>>, %arg3: memref<2x16x8xbf16, #tpu.memory_space<vmem>>, %arg4: memref<10x128x128xbf16, #tpu.memory_space<vmem>>, %arg5: memref<2x384x128xbf16, #tpu.memory_space<vmem>>, %arg6: memref<12x1x128xf32, #tpu.memory_space<vmem>>, %arg7: memref<2x16x128xf32, #tpu.memory_space<vmem>>, %arg8: memref<2x8x128xf32, #tpu.memory_space<vmem>>) attributes {dimension_semantics = [], scalar_prefetch = 0 : i64, scratch_operands = 0 : i64, tpu.core_type = #tpu.core_type<tc>} {
    %c0 = arith.constant 0 : index
    %c0_0 = arith.constant 0 : index
    %0 = vector.load %arg0[%c0, %c0_0] : memref<16x128xf32, #tpu.memory_space<vmem>>, vector<16x128xf32>
    %c0_1 = arith.constant 0 : index
    %c0_2 = arith.constant 0 : index
    %1 = vector.load %arg1[%c0_1, %c0_2] : memref<8x128xf32, #tpu.memory_space<vmem>>, vector<8x128xf32>
    %c0_3 = arith.constant 0 : index
    %c0_4 = arith.constant 0 : index
    %c0_5 = arith.constant 0 : index
    %2 = vector.load %arg4[%c0_3, %c0_4, %c0_5] : memref<10x128x128xbf16, #tpu.memory_space<vmem>>, vector<1x128x128xbf16>
    %3 = vector.shape_cast %2 : vector<1x128x128xbf16> to vector<128x128xbf16>
    %c0_6 = arith.constant 0 : index
    %c0_7 = arith.constant 0 : index
    %c0_8 = arith.constant 0 : index
    %4 = vector.load %arg6[%c0_6, %c0_7, %c0_8] : memref<12x1x128xf32, #tpu.memory_space<vmem>>, vector<1x1x128xf32>
    %5 = vector.shape_cast %4 : vector<1x1x128xf32> to vector<1x128xf32>
    %c1 = arith.constant 1 : index
    %c0_9 = arith.constant 0 : index
    %c0_10 = arith.constant 0 : index
    %6 = vector.load %arg4[%c1, %c0_9, %c0_10] : memref<10x128x128xbf16, #tpu.memory_space<vmem>>, vector<1x128x128xbf16>
    %7 = vector.shape_cast %6 : vector<1x128x128xbf16> to vector<128x128xbf16>
    %c1_11 = arith.constant 1 : index
    %c0_12 = arith.constant 0 : index
    %c0_13 = arith.constant 0 : index
    %8 = vector.load %arg6[%c1_11, %c0_12, %c0_13] : memref<12x1x128xf32, #tpu.memory_space<vmem>>, vector<1x1x128xf32>
    %9 = vector.shape_cast %8 : vector<1x1x128xf32> to vector<1x128xf32>
    %10 = arith.truncf %0 : vector<16x128xf32> to vector<16x128xbf16>
    %cst = arith.constant dense<0.000000e+00> : vector<16x128xf32>
    %11 = tpu.matmul %10, %3, %cst {dimension_numbers = #tpu.dot_dimension_numbers<[1], [0], [0], [1], [0, 0, 1, 1], [], []>} : vector<16x128xbf16>, vector<128x128xbf16>, vector<16x128xf32> -> vector<16x128xf32>
    %12 = vector.broadcast %5 : vector<1x128xf32> to vector<16x128xf32>
    %13 = arith.addf %11, %12 : vector<16x128xf32>
    %cst_14 = arith.constant 0.000000e+00 : f32
    %14 = vector.broadcast %cst_14 : f32 to vector<16x128xf32>
    %15 = arith.maximumf %13, %14 : vector<16x128xf32>
    %16 = arith.truncf %15 : vector<16x128xf32> to vector<16x128xbf16>
    %cst_15 = arith.constant dense<0.000000e+00> : vector<16x128xf32>
    %17 = tpu.matmul %16, %7, %cst_15 {dimension_numbers = #tpu.dot_dimension_numbers<[1], [0], [0], [1], [0, 0, 1, 1], [], []>} : vector<16x128xbf16>, vector<128x128xbf16>, vector<16x128xf32> -> vector<16x128xf32>
    %18 = vector.broadcast %9 : vector<1x128xf32> to vector<16x128xf32>
    %19 = arith.addf %17, %18 : vector<16x128xf32>
    %c2 = arith.constant 2 : index
    %c0_16 = arith.constant 0 : index
    %c0_17 = arith.constant 0 : index
    %20 = vector.load %arg4[%c2, %c0_16, %c0_17] : memref<10x128x128xbf16, #tpu.memory_space<vmem>>, vector<1x128x128xbf16>
    %21 = vector.shape_cast %20 : vector<1x128x128xbf16> to vector<128x128xbf16>
    %c2_18 = arith.constant 2 : index
    %c0_19 = arith.constant 0 : index
    %c0_20 = arith.constant 0 : index
    %22 = vector.load %arg6[%c2_18, %c0_19, %c0_20] : memref<12x1x128xf32, #tpu.memory_space<vmem>>, vector<1x1x128xf32>
    %23 = vector.shape_cast %22 : vector<1x1x128xf32> to vector<1x128xf32>
    %c3 = arith.constant 3 : index
    %c0_21 = arith.constant 0 : index
    %c0_22 = arith.constant 0 : index
    %24 = vector.load %arg4[%c3, %c0_21, %c0_22] : memref<10x128x128xbf16, #tpu.memory_space<vmem>>, vector<1x128x128xbf16>
    %25 = vector.shape_cast %24 : vector<1x128x128xbf16> to vector<128x128xbf16>
    %c3_23 = arith.constant 3 : index
    %c0_24 = arith.constant 0 : index
    %c0_25 = arith.constant 0 : index
    %26 = vector.load %arg6[%c3_23, %c0_24, %c0_25] : memref<12x1x128xf32, #tpu.memory_space<vmem>>, vector<1x1x128xf32>
    %27 = vector.shape_cast %26 : vector<1x1x128xf32> to vector<1x128xf32>
    %28 = arith.truncf %0 : vector<16x128xf32> to vector<16x128xbf16>
    %cst_26 = arith.constant dense<0.000000e+00> : vector<16x128xf32>
    %29 = tpu.matmul %28, %21, %cst_26 {dimension_numbers = #tpu.dot_dimension_numbers<[1], [0], [0], [1], [0, 0, 1, 1], [], []>} : vector<16x128xbf16>, vector<128x128xbf16>, vector<16x128xf32> -> vector<16x128xf32>
    %30 = vector.broadcast %23 : vector<1x128xf32> to vector<16x128xf32>
    %31 = arith.addf %29, %30 : vector<16x128xf32>
    %cst_27 = arith.constant 0.000000e+00 : f32
    %32 = vector.broadcast %cst_27 : f32 to vector<16x128xf32>
    %33 = arith.maximumf %31, %32 : vector<16x128xf32>
    %34 = arith.truncf %33 : vector<16x128xf32> to vector<16x128xbf16>
    %cst_28 = arith.constant dense<0.000000e+00> : vector<16x128xf32>
    %35 = tpu.matmul %34, %25, %cst_28 {dimension_numbers = #tpu.dot_dimension_numbers<[1], [0], [0], [1], [0, 0, 1, 1], [], []>} : vector<16x128xbf16>, vector<128x128xbf16>, vector<16x128xf32> -> vector<16x128xf32>
    %36 = vector.broadcast %27 : vector<1x128xf32> to vector<16x128xf32>
    %37 = arith.addf %35, %36 : vector<16x128xf32>
    %c4 = arith.constant 4 : index
    %c0_29 = arith.constant 0 : index
    %c0_30 = arith.constant 0 : index
    %38 = vector.load %arg4[%c4, %c0_29, %c0_30] : memref<10x128x128xbf16, #tpu.memory_space<vmem>>, vector<1x128x128xbf16>
    %39 = vector.shape_cast %38 : vector<1x128x128xbf16> to vector<128x128xbf16>
    %c4_31 = arith.constant 4 : index
    %c0_32 = arith.constant 0 : index
    %c0_33 = arith.constant 0 : index
    %40 = vector.load %arg6[%c4_31, %c0_32, %c0_33] : memref<12x1x128xf32, #tpu.memory_space<vmem>>, vector<1x1x128xf32>
    %41 = vector.shape_cast %40 : vector<1x1x128xf32> to vector<1x128xf32>
    %c5 = arith.constant 5 : index
    %c0_34 = arith.constant 0 : index
    %c0_35 = arith.constant 0 : index
    %42 = vector.load %arg4[%c5, %c0_34, %c0_35] : memref<10x128x128xbf16, #tpu.memory_space<vmem>>, vector<1x128x128xbf16>
    %43 = vector.shape_cast %42 : vector<1x128x128xbf16> to vector<128x128xbf16>
    %c5_36 = arith.constant 5 : index
    %c0_37 = arith.constant 0 : index
    %c0_38 = arith.constant 0 : index
    %44 = vector.load %arg6[%c5_36, %c0_37, %c0_38] : memref<12x1x128xf32, #tpu.memory_space<vmem>>, vector<1x1x128xf32>
    %45 = vector.shape_cast %44 : vector<1x1x128xf32> to vector<1x128xf32>
    %46 = arith.truncf %1 : vector<8x128xf32> to vector<8x128xbf16>
    %cst_39 = arith.constant dense<0.000000e+00> : vector<8x128xf32>
    %47 = tpu.matmul %46, %39, %cst_39 {dimension_numbers = #tpu.dot_dimension_numbers<[1], [0], [0], [1], [0, 0, 1, 1], [], []>} : vector<8x128xbf16>, vector<128x128xbf16>, vector<8x128xf32> -> vector<8x128xf32>
    %48 = vector.broadcast %41 : vector<1x128xf32> to vector<8x128xf32>
    %49 = arith.addf %47, %48 : vector<8x128xf32>
    %cst_40 = arith.constant 0.000000e+00 : f32
    %50 = vector.broadcast %cst_40 : f32 to vector<8x128xf32>
    %51 = arith.maximumf %49, %50 : vector<8x128xf32>
    %52 = arith.truncf %51 : vector<8x128xf32> to vector<8x128xbf16>
    %cst_41 = arith.constant dense<0.000000e+00> : vector<8x128xf32>
    %53 = tpu.matmul %52, %43, %cst_41 {dimension_numbers = #tpu.dot_dimension_numbers<[1], [0], [0], [1], [0, 0, 1, 1], [], []>} : vector<8x128xbf16>, vector<128x128xbf16>, vector<8x128xf32> -> vector<8x128xf32>
    %54 = vector.broadcast %45 : vector<1x128xf32> to vector<8x128xf32>
    %55 = arith.addf %53, %54 : vector<8x128xf32>
    %c6 = arith.constant 6 : index
    %c0_42 = arith.constant 0 : index
    %c0_43 = arith.constant 0 : index
    %56 = vector.load %arg4[%c6, %c0_42, %c0_43] : memref<10x128x128xbf16, #tpu.memory_space<vmem>>, vector<1x128x128xbf16>
    %57 = vector.shape_cast %56 : vector<1x128x128xbf16> to vector<128x128xbf16>
    %c6_44 = arith.constant 6 : index
    %c0_45 = arith.constant 0 : index
    %c0_46 = arith.constant 0 : index
    %58 = vector.load %arg6[%c6_44, %c0_45, %c0_46] : memref<12x1x128xf32, #tpu.memory_space<vmem>>, vector<1x1x128xf32>
    %59 = vector.shape_cast %58 : vector<1x1x128xf32> to vector<1x128xf32>
    %c7 = arith.constant 7 : index
    %c0_47 = arith.constant 0 : index
    %c0_48 = arith.constant 0 : index
    %60 = vector.load %arg4[%c7, %c0_47, %c0_48] : memref<10x128x128xbf16, #tpu.memory_space<vmem>>, vector<1x128x128xbf16>
    %61 = vector.shape_cast %60 : vector<1x128x128xbf16> to vector<128x128xbf16>
    %c7_49 = arith.constant 7 : index
    %c0_50 = arith.constant 0 : index
    %c0_51 = arith.constant 0 : index
    %62 = vector.load %arg6[%c7_49, %c0_50, %c0_51] : memref<12x1x128xf32, #tpu.memory_space<vmem>>, vector<1x1x128xf32>
    %63 = vector.shape_cast %62 : vector<1x1x128xf32> to vector<1x128xf32>
    %64 = arith.truncf %1 : vector<8x128xf32> to vector<8x128xbf16>
    %cst_52 = arith.constant dense<0.000000e+00> : vector<8x128xf32>
    %65 = tpu.matmul %64, %57, %cst_52 {dimension_numbers = #tpu.dot_dimension_numbers<[1], [0], [0], [1], [0, 0, 1, 1], [], []>} : vector<8x128xbf16>, vector<128x128xbf16>, vector<8x128xf32> -> vector<8x128xf32>
    %66 = vector.broadcast %59 : vector<1x128xf32> to vector<8x128xf32>
    %67 = arith.addf %65, %66 : vector<8x128xf32>
    %cst_53 = arith.constant 0.000000e+00 : f32
    %68 = vector.broadcast %cst_53 : f32 to vector<8x128xf32>
    %69 = arith.maximumf %67, %68 : vector<8x128xf32>
    %70 = arith.truncf %69 : vector<8x128xf32> to vector<8x128xbf16>
    %cst_54 = arith.constant dense<0.000000e+00> : vector<8x128xf32>
    %71 = tpu.matmul %70, %61, %cst_54 {dimension_numbers = #tpu.dot_dimension_numbers<[1], [0], [0], [1], [0, 0, 1, 1], [], []>} : vector<8x128xbf16>, vector<128x128xbf16>, vector<8x128xf32> -> vector<8x128xf32>
    %72 = vector.broadcast %63 : vector<1x128xf32> to vector<8x128xf32>
    %73 = arith.addf %71, %72 : vector<8x128xf32>
    %c0_55 = arith.constant 0 : index
    %c0_56 = arith.constant 0 : index
    %c0_57 = arith.constant 0 : index
    %74 = vector.load %arg2[%c0_55, %c0_56, %c0_57] : memref<2x8x16xbf16, #tpu.memory_space<vmem>>, vector<1x8x16xbf16>
    %75 = vector.shape_cast %74 : vector<1x8x16xbf16> to vector<8x16xbf16>
    %76 = arith.truncf %19 : vector<16x128xf32> to vector<16x128xbf16>
    %cst_58 = arith.constant dense<0.000000e+00> : vector<8x128xf32>
    %77 = tpu.matmul %75, %76, %cst_58 {dimension_numbers = #tpu.dot_dimension_numbers<[1], [0], [0], [1], [0, 0, 1, 1], [], []>} : vector<8x16xbf16>, vector<16x128xbf16>, vector<8x128xf32> -> vector<8x128xf32>
    %c1_59 = arith.constant 1 : index
    %c0_60 = arith.constant 0 : index
    %c0_61 = arith.constant 0 : index
    %78 = vector.load %arg2[%c1_59, %c0_60, %c0_61] : memref<2x8x16xbf16, #tpu.memory_space<vmem>>, vector<1x8x16xbf16>
    %79 = vector.shape_cast %78 : vector<1x8x16xbf16> to vector<8x16xbf16>
    %80 = arith.truncf %37 : vector<16x128xf32> to vector<16x128xbf16>
    %cst_62 = arith.constant dense<0.000000e+00> : vector<8x128xf32>
    %81 = tpu.matmul %79, %80, %cst_62 {dimension_numbers = #tpu.dot_dimension_numbers<[1], [0], [0], [1], [0, 0, 1, 1], [], []>} : vector<8x16xbf16>, vector<16x128xbf16>, vector<8x128xf32> -> vector<8x128xf32>
    %c0_63 = arith.constant 0 : index
    %c0_64 = arith.constant 0 : index
    %c0_65 = arith.constant 0 : index
    %82 = vector.load %arg3[%c0_63, %c0_64, %c0_65] : memref<2x16x8xbf16, #tpu.memory_space<vmem>>, vector<1x16x8xbf16>
    %83 = vector.shape_cast %82 : vector<1x16x8xbf16> to vector<16x8xbf16>
    %84 = arith.truncf %55 : vector<8x128xf32> to vector<8x128xbf16>
    %cst_66 = arith.constant dense<0.000000e+00> : vector<16x128xf32>
    %85 = tpu.matmul %83, %84, %cst_66 {dimension_numbers = #tpu.dot_dimension_numbers<[1], [0], [0], [1], [0, 0, 1, 1], [], []>} : vector<16x8xbf16>, vector<8x128xbf16>, vector<16x128xf32> -> vector<16x128xf32>
    %c1_67 = arith.constant 1 : index
    %c0_68 = arith.constant 0 : index
    %c0_69 = arith.constant 0 : index
    %86 = vector.load %arg3[%c1_67, %c0_68, %c0_69] : memref<2x16x8xbf16, #tpu.memory_space<vmem>>, vector<1x16x8xbf16>
    %87 = vector.shape_cast %86 : vector<1x16x8xbf16> to vector<16x8xbf16>
    %88 = arith.truncf %73 : vector<8x128xf32> to vector<8x128xbf16>
    %cst_70 = arith.constant dense<0.000000e+00> : vector<16x128xf32>
    %89 = tpu.matmul %87, %88, %cst_70 {dimension_numbers = #tpu.dot_dimension_numbers<[1], [0], [0], [1], [0, 0, 1, 1], [], []>} : vector<16x8xbf16>, vector<8x128xbf16>, vector<16x128xf32> -> vector<16x128xf32>
    %90 = tpu.concatenate %1, %77, %81 in 1 : vector<8x128xf32>, vector<8x128xf32>, vector<8x128xf32> -> vector<8x384xf32>
    %c0_71 = arith.constant 0 : index
    %c0_72 = arith.constant 0 : index
    %c0_73 = arith.constant 0 : index
    %91 = vector.load %arg5[%c0_71, %c0_72, %c0_73] : memref<2x384x128xbf16, #tpu.memory_space<vmem>>, vector<1x384x128xbf16>
    %92 = vector.shape_cast %91 : vector<1x384x128xbf16> to vector<384x128xbf16>
    %c8 = arith.constant 8 : index
    %c0_74 = arith.constant 0 : index
    %c0_75 = arith.constant 0 : index
    %93 = vector.load %arg6[%c8, %c0_74, %c0_75] : memref<12x1x128xf32, #tpu.memory_space<vmem>>, vector<1x1x128xf32>
    %94 = vector.shape_cast %93 : vector<1x1x128xf32> to vector<1x128xf32>
    %c8_76 = arith.constant 8 : index
    %c0_77 = arith.constant 0 : index
    %c0_78 = arith.constant 0 : index
    %95 = vector.load %arg4[%c8_76, %c0_77, %c0_78] : memref<10x128x128xbf16, #tpu.memory_space<vmem>>, vector<1x128x128xbf16>
    %96 = vector.shape_cast %95 : vector<1x128x128xbf16> to vector<128x128xbf16>
    %c9 = arith.constant 9 : index
    %c0_79 = arith.constant 0 : index
    %c0_80 = arith.constant 0 : index
    %97 = vector.load %arg6[%c9, %c0_79, %c0_80] : memref<12x1x128xf32, #tpu.memory_space<vmem>>, vector<1x1x128xf32>
    %98 = vector.shape_cast %97 : vector<1x1x128xf32> to vector<1x128xf32>
    %99 = arith.truncf %90 : vector<8x384xf32> to vector<8x384xbf16>
    %cst_81 = arith.constant dense<0.000000e+00> : vector<8x128xf32>
    %100 = tpu.matmul %99, %92, %cst_81 {dimension_numbers = #tpu.dot_dimension_numbers<[1], [0], [0], [1], [0, 0, 1, 1], [], []>} : vector<8x384xbf16>, vector<384x128xbf16>, vector<8x128xf32> -> vector<8x128xf32>
    %101 = vector.broadcast %94 : vector<1x128xf32> to vector<8x128xf32>
    %102 = arith.addf %100, %101 : vector<8x128xf32>
    %cst_82 = arith.constant 0.000000e+00 : f32
    %103 = vector.broadcast %cst_82 : f32 to vector<8x128xf32>
    %104 = arith.maximumf %102, %103 : vector<8x128xf32>
    %105 = arith.truncf %104 : vector<8x128xf32> to vector<8x128xbf16>
    %cst_83 = arith.constant dense<0.000000e+00> : vector<8x128xf32>
    %106 = tpu.matmul %105, %96, %cst_83 {dimension_numbers = #tpu.dot_dimension_numbers<[1], [0], [0], [1], [0, 0, 1, 1], [], []>} : vector<8x128xbf16>, vector<128x128xbf16>, vector<8x128xf32> -> vector<8x128xf32>
    %107 = vector.broadcast %98 : vector<1x128xf32> to vector<8x128xf32>
    %108 = arith.addf %106, %107 : vector<8x128xf32>
    %109 = tpu.concatenate %0, %85, %89 in 1 : vector<16x128xf32>, vector<16x128xf32>, vector<16x128xf32> -> vector<16x384xf32>
    %c1_84 = arith.constant 1 : index
    %c0_85 = arith.constant 0 : index
    %c0_86 = arith.constant 0 : index
    %110 = vector.load %arg5[%c1_84, %c0_85, %c0_86] : memref<2x384x128xbf16, #tpu.memory_space<vmem>>, vector<1x384x128xbf16>
    %111 = vector.shape_cast %110 : vector<1x384x128xbf16> to vector<384x128xbf16>
    %c10 = arith.constant 10 : index
    %c0_87 = arith.constant 0 : index
    %c0_88 = arith.constant 0 : index
    %112 = vector.load %arg6[%c10, %c0_87, %c0_88] : memref<12x1x128xf32, #tpu.memory_space<vmem>>, vector<1x1x128xf32>
    %113 = vector.shape_cast %112 : vector<1x1x128xf32> to vector<1x128xf32>
    %c9_89 = arith.constant 9 : index
    %c0_90 = arith.constant 0 : index
    %c0_91 = arith.constant 0 : index
    %114 = vector.load %arg4[%c9_89, %c0_90, %c0_91] : memref<10x128x128xbf16, #tpu.memory_space<vmem>>, vector<1x128x128xbf16>
    %115 = vector.shape_cast %114 : vector<1x128x128xbf16> to vector<128x128xbf16>
    %c11 = arith.constant 11 : index
    %c0_92 = arith.constant 0 : index
    %c0_93 = arith.constant 0 : index
    %116 = vector.load %arg6[%c11, %c0_92, %c0_93] : memref<12x1x128xf32, #tpu.memory_space<vmem>>, vector<1x1x128xf32>
    %117 = vector.shape_cast %116 : vector<1x1x128xf32> to vector<1x128xf32>
    %118 = arith.truncf %109 : vector<16x384xf32> to vector<16x384xbf16>
    %cst_94 = arith.constant dense<0.000000e+00> : vector<16x128xf32>
    %119 = tpu.matmul %118, %111, %cst_94 {dimension_numbers = #tpu.dot_dimension_numbers<[1], [0], [0], [1], [0, 0, 1, 1], [], []>} : vector<16x384xbf16>, vector<384x128xbf16>, vector<16x128xf32> -> vector<16x128xf32>
    %120 = vector.broadcast %113 : vector<1x128xf32> to vector<16x128xf32>
    %121 = arith.addf %119, %120 : vector<16x128xf32>
    %cst_95 = arith.constant 0.000000e+00 : f32
    %122 = vector.broadcast %cst_95 : f32 to vector<16x128xf32>
    %123 = arith.maximumf %121, %122 : vector<16x128xf32>
    %124 = arith.truncf %123 : vector<16x128xf32> to vector<16x128xbf16>
    %cst_96 = arith.constant dense<0.000000e+00> : vector<16x128xf32>
    %125 = tpu.matmul %124, %115, %cst_96 {dimension_numbers = #tpu.dot_dimension_numbers<[1], [0], [0], [1], [0, 0, 1, 1], [], []>} : vector<16x128xbf16>, vector<128x128xbf16>, vector<16x128xf32> -> vector<16x128xf32>
    %126 = vector.broadcast %117 : vector<1x128xf32> to vector<16x128xf32>
    %127 = arith.addf %125, %126 : vector<16x128xf32>
    %c0_97 = arith.constant 0 : index
    %c0_98 = arith.constant 0 : index
    %c0_99 = arith.constant 0 : index
    %128 = vector.load %arg7[%c0_97, %c0_98, %c0_99] : memref<2x16x128xf32, #tpu.memory_space<vmem>>, vector<1x16x128xf32>
    %129 = vector.shape_cast %128 : vector<1x16x128xf32> to vector<16x128xf32>
    %130 = vector.shape_cast %127 : vector<16x128xf32> to vector<1x16x128xf32>
    tpu.vector_store %arg7[%c0_97, %c0_98, %c0_99], %130 {strides = array<i32>} : memref<2x16x128xf32, #tpu.memory_space<vmem>>, vector<1x16x128xf32>,
    %c0_100 = arith.constant 0 : index
    %c0_101 = arith.constant 0 : index
    %c0_102 = arith.constant 0 : index
    %131 = vector.load %arg8[%c0_100, %c0_101, %c0_102] : memref<2x8x128xf32, #tpu.memory_space<vmem>>, vector<1x8x128xf32>
    %132 = vector.shape_cast %131 : vector<1x8x128xf32> to vector<8x128xf32>
    %133 = vector.shape_cast %108 : vector<8x128xf32> to vector<1x8x128xf32>
    tpu.vector_store %arg8[%c0_100, %c0_101, %c0_102], %133 {strides = array<i32>} : memref<2x8x128xf32, #tpu.memory_space<vmem>>, vector<1x8x128xf32>,
    %c0_103 = arith.constant 0 : index
    %c0_104 = arith.constant 0 : index
    %c0_105 = arith.constant 0 : index
    %134 = vector.load %arg4[%c0_103, %c0_104, %c0_105] : memref<10x128x128xbf16, #tpu.memory_space<vmem>>, vector<1x128x128xbf16>
    %135 = vector.shape_cast %134 : vector<1x128x128xbf16> to vector<128x128xbf16>
    %c0_106 = arith.constant 0 : index
    %c0_107 = arith.constant 0 : index
    %c0_108 = arith.constant 0 : index
    %136 = vector.load %arg6[%c0_106, %c0_107, %c0_108] : memref<12x1x128xf32, #tpu.memory_space<vmem>>, vector<1x1x128xf32>
    %137 = vector.shape_cast %136 : vector<1x1x128xf32> to vector<1x128xf32>
    %c1_109 = arith.constant 1 : index
    %c0_110 = arith.constant 0 : index
    %c0_111 = arith.constant 0 : index
    %138 = vector.load %arg4[%c1_109, %c0_110, %c0_111] : memref<10x128x128xbf16, #tpu.memory_space<vmem>>, vector<1x128x128xbf16>
    %139 = vector.shape_cast %138 : vector<1x128x128xbf16> to vector<128x128xbf16>
    %c1_112 = arith.constant 1 : index
    %c0_113 = arith.constant 0 : index
    %c0_114 = arith.constant 0 : index
    %140 = vector.load %arg6[%c1_112, %c0_113, %c0_114] : memref<12x1x128xf32, #tpu.memory_space<vmem>>, vector<1x1x128xf32>
    %141 = vector.shape_cast %140 : vector<1x1x128xf32> to vector<1x128xf32>
    %142 = arith.truncf %127 : vector<16x128xf32> to vector<16x128xbf16>
    %cst_115 = arith.constant dense<0.000000e+00> : vector<16x128xf32>
    %143 = tpu.matmul %142, %135, %cst_115 {dimension_numbers = #tpu.dot_dimension_numbers<[1], [0], [0], [1], [0, 0, 1, 1], [], []>} : vector<16x128xbf16>, vector<128x128xbf16>, vector<16x128xf32> -> vector<16x128xf32>
    %144 = vector.broadcast %137 : vector<1x128xf32> to vector<16x128xf32>
    %145 = arith.addf %143, %144 : vector<16x128xf32>
    %cst_116 = arith.constant 0.000000e+00 : f32
    %146 = vector.broadcast %cst_116 : f32 to vector<16x128xf32>
    %147 = arith.maximumf %145, %146 : vector<16x128xf32>
    %148 = arith.truncf %147 : vector<16x128xf32> to vector<16x128xbf16>
    %cst_117 = arith.constant dense<0.000000e+00> : vector<16x128xf32>
    %149 = tpu.matmul %148, %139, %cst_117 {dimension_numbers = #tpu.dot_dimension_numbers<[1], [0], [0], [1], [0, 0, 1, 1], [], []>} : vector<16x128xbf16>, vector<128x128xbf16>, vector<16x128xf32> -> vector<16x128xf32>
    %150 = vector.broadcast %141 : vector<1x128xf32> to vector<16x128xf32>
    %151 = arith.addf %149, %150 : vector<16x128xf32>
    %c2_118 = arith.constant 2 : index
    %c0_119 = arith.constant 0 : index
    %c0_120 = arith.constant 0 : index
    %152 = vector.load %arg4[%c2_118, %c0_119, %c0_120] : memref<10x128x128xbf16, #tpu.memory_space<vmem>>, vector<1x128x128xbf16>
    %153 = vector.shape_cast %152 : vector<1x128x128xbf16> to vector<128x128xbf16>
    %c2_121 = arith.constant 2 : index
    %c0_122 = arith.constant 0 : index
    %c0_123 = arith.constant 0 : index
    %154 = vector.load %arg6[%c2_121, %c0_122, %c0_123] : memref<12x1x128xf32, #tpu.memory_space<vmem>>, vector<1x1x128xf32>
    %155 = vector.shape_cast %154 : vector<1x1x128xf32> to vector<1x128xf32>
    %c3_124 = arith.constant 3 : index
    %c0_125 = arith.constant 0 : index
    %c0_126 = arith.constant 0 : index
    %156 = vector.load %arg4[%c3_124, %c0_125, %c0_126] : memref<10x128x128xbf16, #tpu.memory_space<vmem>>, vector<1x128x128xbf16>
    %157 = vector.shape_cast %156 : vector<1x128x128xbf16> to vector<128x128xbf16>
    %c3_127 = arith.constant 3 : index
    %c0_128 = arith.constant 0 : index
    %c0_129 = arith.constant 0 : index
    %158 = vector.load %arg6[%c3_127, %c0_128, %c0_129] : memref<12x1x128xf32, #tpu.memory_space<vmem>>, vector<1x1x128xf32>
    %159 = vector.shape_cast %158 : vector<1x1x128xf32> to vector<1x128xf32>
    %160 = arith.truncf %127 : vector<16x128xf32> to vector<16x128xbf16>
    %cst_130 = arith.constant dense<0.000000e+00> : vector<16x128xf32>
    %161 = tpu.matmul %160, %153, %cst_130 {dimension_numbers = #tpu.dot_dimension_numbers<[1], [0], [0], [1], [0, 0, 1, 1], [], []>} : vector<16x128xbf16>, vector<128x128xbf16>, vector<16x128xf32> -> vector<16x128xf32>
    %162 = vector.broadcast %155 : vector<1x128xf32> to vector<16x128xf32>
    %163 = arith.addf %161, %162 : vector<16x128xf32>
    %cst_131 = arith.constant 0.000000e+00 : f32
    %164 = vector.broadcast %cst_131 : f32 to vector<16x128xf32>
    %165 = arith.maximumf %163, %164 : vector<16x128xf32>
    %166 = arith.truncf %165 : vector<16x128xf32> to vector<16x128xbf16>
    %cst_132 = arith.constant dense<0.000000e+00> : vector<16x128xf32>
    %167 = tpu.matmul %166, %157, %cst_132 {dimension_numbers = #tpu.dot_dimension_numbers<[1], [0], [0], [1], [0, 0, 1, 1], [], []>} : vector<16x128xbf16>, vector<128x128xbf16>, vector<16x128xf32> -> vector<16x128xf32>
    %168 = vector.broadcast %159 : vector<1x128xf32> to vector<16x128xf32>
    %169 = arith.addf %167, %168 : vector<16x128xf32>
    %c4_133 = arith.constant 4 : index
    %c0_134 = arith.constant 0 : index
    %c0_135 = arith.constant 0 : index
    %170 = vector.load %arg4[%c4_133, %c0_134, %c0_135] : memref<10x128x128xbf16, #tpu.memory_space<vmem>>, vector<1x128x128xbf16>
    %171 = vector.shape_cast %170 : vector<1x128x128xbf16> to vector<128x128xbf16>
    %c4_136 = arith.constant 4 : index
    %c0_137 = arith.constant 0 : index
    %c0_138 = arith.constant 0 : index
    %172 = vector.load %arg6[%c4_136, %c0_137, %c0_138] : memref<12x1x128xf32, #tpu.memory_space<vmem>>, vector<1x1x128xf32>
    %173 = vector.shape_cast %172 : vector<1x1x128xf32> to vector<1x128xf32>
    %c5_139 = arith.constant 5 : index
    %c0_140 = arith.constant 0 : index
    %c0_141 = arith.constant 0 : index
    %174 = vector.load %arg4[%c5_139, %c0_140, %c0_141] : memref<10x128x128xbf16, #tpu.memory_space<vmem>>, vector<1x128x128xbf16>
    %175 = vector.shape_cast %174 : vector<1x128x128xbf16> to vector<128x128xbf16>
    %c5_142 = arith.constant 5 : index
    %c0_143 = arith.constant 0 : index
    %c0_144 = arith.constant 0 : index
    %176 = vector.load %arg6[%c5_142, %c0_143, %c0_144] : memref<12x1x128xf32, #tpu.memory_space<vmem>>, vector<1x1x128xf32>
    %177 = vector.shape_cast %176 : vector<1x1x128xf32> to vector<1x128xf32>
    %178 = arith.truncf %108 : vector<8x128xf32> to vector<8x128xbf16>
    %cst_145 = arith.constant dense<0.000000e+00> : vector<8x128xf32>
    %179 = tpu.matmul %178, %171, %cst_145 {dimension_numbers = #tpu.dot_dimension_numbers<[1], [0], [0], [1], [0, 0, 1, 1], [], []>} : vector<8x128xbf16>, vector<128x128xbf16>, vector<8x128xf32> -> vector<8x128xf32>
    %180 = vector.broadcast %173 : vector<1x128xf32> to vector<8x128xf32>
    %181 = arith.addf %179, %180 : vector<8x128xf32>
    %cst_146 = arith.constant 0.000000e+00 : f32
    %182 = vector.broadcast %cst_146 : f32 to vector<8x128xf32>
    %183 = arith.maximumf %181, %182 : vector<8x128xf32>
    %184 = arith.truncf %183 : vector<8x128xf32> to vector<8x128xbf16>
    %cst_147 = arith.constant dense<0.000000e+00> : vector<8x128xf32>
    %185 = tpu.matmul %184, %175, %cst_147 {dimension_numbers = #tpu.dot_dimension_numbers<[1], [0], [0], [1], [0, 0, 1, 1], [], []>} : vector<8x128xbf16>, vector<128x128xbf16>, vector<8x128xf32> -> vector<8x128xf32>
    %186 = vector.broadcast %177 : vector<1x128xf32> to vector<8x128xf32>
    %187 = arith.addf %185, %186 : vector<8x128xf32>
    %c6_148 = arith.constant 6 : index
    %c0_149 = arith.constant 0 : index
    %c0_150 = arith.constant 0 : index
    %188 = vector.load %arg4[%c6_148, %c0_149, %c0_150] : memref<10x128x128xbf16, #tpu.memory_space<vmem>>, vector<1x128x128xbf16>
    %189 = vector.shape_cast %188 : vector<1x128x128xbf16> to vector<128x128xbf16>
    %c6_151 = arith.constant 6 : index
    %c0_152 = arith.constant 0 : index
    %c0_153 = arith.constant 0 : index
    %190 = vector.load %arg6[%c6_151, %c0_152, %c0_153] : memref<12x1x128xf32, #tpu.memory_space<vmem>>, vector<1x1x128xf32>
    %191 = vector.shape_cast %190 : vector<1x1x128xf32> to vector<1x128xf32>
    %c7_154 = arith.constant 7 : index
    %c0_155 = arith.constant 0 : index
    %c0_156 = arith.constant 0 : index
    %192 = vector.load %arg4[%c7_154, %c0_155, %c0_156] : memref<10x128x128xbf16, #tpu.memory_space<vmem>>, vector<1x128x128xbf16>
    %193 = vector.shape_cast %192 : vector<1x128x128xbf16> to vector<128x128xbf16>
    %c7_157 = arith.constant 7 : index
    %c0_158 = arith.constant 0 : index
    %c0_159 = arith.constant 0 : index
    %194 = vector.load %arg6[%c7_157, %c0_158, %c0_159] : memref<12x1x128xf32, #tpu.memory_space<vmem>>, vector<1x1x128xf32>
    %195 = vector.shape_cast %194 : vector<1x1x128xf32> to vector<1x128xf32>
    %196 = arith.truncf %108 : vector<8x128xf32> to vector<8x128xbf16>
    %cst_160 = arith.constant dense<0.000000e+00> : vector<8x128xf32>
    %197 = tpu.matmul %196, %189, %cst_160 {dimension_numbers = #tpu.dot_dimension_numbers<[1], [0], [0], [1], [0, 0, 1, 1], [], []>} : vector<8x128xbf16>, vector<128x128xbf16>, vector<8x128xf32> -> vector<8x128xf32>
    %198 = vector.broadcast %191 : vector<1x128xf32> to vector<8x128xf32>
    %199 = arith.addf %197, %198 : vector<8x128xf32>
    %cst_161 = arith.constant 0.000000e+00 : f32
    %200 = vector.broadcast %cst_161 : f32 to vector<8x128xf32>
    %201 = arith.maximumf %199, %200 : vector<8x128xf32>
    %202 = arith.truncf %201 : vector<8x128xf32> to vector<8x128xbf16>
    %cst_162 = arith.constant dense<0.000000e+00> : vector<8x128xf32>
    %203 = tpu.matmul %202, %193, %cst_162 {dimension_numbers = #tpu.dot_dimension_numbers<[1], [0], [0], [1], [0, 0, 1, 1], [], []>} : vector<8x128xbf16>, vector<128x128xbf16>, vector<8x128xf32> -> vector<8x128xf32>
    %204 = vector.broadcast %195 : vector<1x128xf32> to vector<8x128xf32>
    %205 = arith.addf %203, %204 : vector<8x128xf32>
    %c0_163 = arith.constant 0 : index
    %c0_164 = arith.constant 0 : index
    %c0_165 = arith.constant 0 : index
    %206 = vector.load %arg2[%c0_163, %c0_164, %c0_165] : memref<2x8x16xbf16, #tpu.memory_space<vmem>>, vector<1x8x16xbf16>
    %207 = vector.shape_cast %206 : vector<1x8x16xbf16> to vector<8x16xbf16>
    %208 = arith.truncf %151 : vector<16x128xf32> to vector<16x128xbf16>
    %cst_166 = arith.constant dense<0.000000e+00> : vector<8x128xf32>
    %209 = tpu.matmul %207, %208, %cst_166 {dimension_numbers = #tpu.dot_dimension_numbers<[1], [0], [0], [1], [0, 0, 1, 1], [], []>} : vector<8x16xbf16>, vector<16x128xbf16>, vector<8x128xf32> -> vector<8x128xf32>
    %c1_167 = arith.constant 1 : index
    %c0_168 = arith.constant 0 : index
    %c0_169 = arith.constant 0 : index
    %210 = vector.load %arg2[%c1_167, %c0_168, %c0_169] : memref<2x8x16xbf16, #tpu.memory_space<vmem>>, vector<1x8x16xbf16>
    %211 = vector.shape_cast %210 : vector<1x8x16xbf16> to vector<8x16xbf16>
    %212 = arith.truncf %169 : vector<16x128xf32> to vector<16x128xbf16>
    %cst_170 = arith.constant dense<0.000000e+00> : vector<8x128xf32>
    %213 = tpu.matmul %211, %212, %cst_170 {dimension_numbers = #tpu.dot_dimension_numbers<[1], [0], [0], [1], [0, 0, 1, 1], [], []>} : vector<8x16xbf16>, vector<16x128xbf16>, vector<8x128xf32> -> vector<8x128xf32>
    %c0_171 = arith.constant 0 : index
    %c0_172 = arith.constant 0 : index
    %c0_173 = arith.constant 0 : index
    %214 = vector.load %arg3[%c0_171, %c0_172, %c0_173] : memref<2x16x8xbf16, #tpu.memory_space<vmem>>, vector<1x16x8xbf16>
    %215 = vector.shape_cast %214 : vector<1x16x8xbf16> to vector<16x8xbf16>
    %216 = arith.truncf %187 : vector<8x128xf32> to vector<8x128xbf16>
    %cst_174 = arith.constant dense<0.000000e+00> : vector<16x128xf32>
    %217 = tpu.matmul %215, %216, %cst_174 {dimension_numbers = #tpu.dot_dimension_numbers<[1], [0], [0], [1], [0, 0, 1, 1], [], []>} : vector<16x8xbf16>, vector<8x128xbf16>, vector<16x128xf32> -> vector<16x128xf32>
    %c1_175 = arith.constant 1 : index
    %c0_176 = arith.constant 0 : index
    %c0_177 = arith.constant 0 : index
    %218 = vector.load %arg3[%c1_175, %c0_176, %c0_177] : memref<2x16x8xbf16, #tpu.memory_space<vmem>>, vector<1x16x8xbf16>
    %219 = vector.shape_cast %218 : vector<1x16x8xbf16> to vector<16x8xbf16>
    %220 = arith.truncf %205 : vector<8x128xf32> to vector<8x128xbf16>
    %cst_178 = arith.constant dense<0.000000e+00> : vector<16x128xf32>
    %221 = tpu.matmul %219, %220, %cst_178 {dimension_numbers = #tpu.dot_dimension_numbers<[1], [0], [0], [1], [0, 0, 1, 1], [], []>} : vector<16x8xbf16>, vector<8x128xbf16>, vector<16x128xf32> -> vector<16x128xf32>
    %222 = tpu.concatenate %108, %209, %213 in 1 : vector<8x128xf32>, vector<8x128xf32>, vector<8x128xf32> -> vector<8x384xf32>
    %c0_179 = arith.constant 0 : index
    %c0_180 = arith.constant 0 : index
    %c0_181 = arith.constant 0 : index
    %223 = vector.load %arg5[%c0_179, %c0_180, %c0_181] : memref<2x384x128xbf16, #tpu.memory_space<vmem>>, vector<1x384x128xbf16>
    %224 = vector.shape_cast %223 : vector<1x384x128xbf16> to vector<384x128xbf16>
    %c8_182 = arith.constant 8 : index
    %c0_183 = arith.constant 0 : index
    %c0_184 = arith.constant 0 : index
    %225 = vector.load %arg6[%c8_182, %c0_183, %c0_184] : memref<12x1x128xf32, #tpu.memory_space<vmem>>, vector<1x1x128xf32>
    %226 = vector.shape_cast %225 : vector<1x1x128xf32> to vector<1x128xf32>
    %c8_185 = arith.constant 8 : index
    %c0_186 = arith.constant 0 : index
    %c0_187 = arith.constant 0 : index
    %227 = vector.load %arg4[%c8_185, %c0_186, %c0_187] : memref<10x128x128xbf16, #tpu.memory_space<vmem>>, vector<1x128x128xbf16>
    %228 = vector.shape_cast %227 : vector<1x128x128xbf16> to vector<128x128xbf16>
    %c9_188 = arith.constant 9 : index
    %c0_189 = arith.constant 0 : index
    %c0_190 = arith.constant 0 : index
    %229 = vector.load %arg6[%c9_188, %c0_189, %c0_190] : memref<12x1x128xf32, #tpu.memory_space<vmem>>, vector<1x1x128xf32>
    %230 = vector.shape_cast %229 : vector<1x1x128xf32> to vector<1x128xf32>
    %231 = arith.truncf %222 : vector<8x384xf32> to vector<8x384xbf16>
    %cst_191 = arith.constant dense<0.000000e+00> : vector<8x128xf32>
    %232 = tpu.matmul %231, %224, %cst_191 {dimension_numbers = #tpu.dot_dimension_numbers<[1], [0], [0], [1], [0, 0, 1, 1], [], []>} : vector<8x384xbf16>, vector<384x128xbf16>, vector<8x128xf32> -> vector<8x128xf32>
    %233 = vector.broadcast %226 : vector<1x128xf32> to vector<8x128xf32>
    %234 = arith.addf %232, %233 : vector<8x128xf32>
    %cst_192 = arith.constant 0.000000e+00 : f32
    %235 = vector.broadcast %cst_192 : f32 to vector<8x128xf32>
    %236 = arith.maximumf %234, %235 : vector<8x128xf32>
    %237 = arith.truncf %236 : vector<8x128xf32> to vector<8x128xbf16>
    %cst_193 = arith.constant dense<0.000000e+00> : vector<8x128xf32>
    %238 = tpu.matmul %237, %228, %cst_193 {dimension_numbers = #tpu.dot_dimension_numbers<[1], [0], [0], [1], [0, 0, 1, 1], [], []>} : vector<8x128xbf16>, vector<128x128xbf16>, vector<8x128xf32> -> vector<8x128xf32>
    %239 = vector.broadcast %230 : vector<1x128xf32> to vector<8x128xf32>
    %240 = arith.addf %238, %239 : vector<8x128xf32>
    %241 = tpu.concatenate %127, %217, %221 in 1 : vector<16x128xf32>, vector<16x128xf32>, vector<16x128xf32> -> vector<16x384xf32>
    %c1_194 = arith.constant 1 : index
    %c0_195 = arith.constant 0 : index
    %c0_196 = arith.constant 0 : index
    %242 = vector.load %arg5[%c1_194, %c0_195, %c0_196] : memref<2x384x128xbf16, #tpu.memory_space<vmem>>, vector<1x384x128xbf16>
    %243 = vector.shape_cast %242 : vector<1x384x128xbf16> to vector<384x128xbf16>
    %c10_197 = arith.constant 10 : index
    %c0_198 = arith.constant 0 : index
    %c0_199 = arith.constant 0 : index
    %244 = vector.load %arg6[%c10_197, %c0_198, %c0_199] : memref<12x1x128xf32, #tpu.memory_space<vmem>>, vector<1x1x128xf32>
    %245 = vector.shape_cast %244 : vector<1x1x128xf32> to vector<1x128xf32>
    %c9_200 = arith.constant 9 : index
    %c0_201 = arith.constant 0 : index
    %c0_202 = arith.constant 0 : index
    %246 = vector.load %arg4[%c9_200, %c0_201, %c0_202] : memref<10x128x128xbf16, #tpu.memory_space<vmem>>, vector<1x128x128xbf16>
    %247 = vector.shape_cast %246 : vector<1x128x128xbf16> to vector<128x128xbf16>
    %c11_203 = arith.constant 11 : index
    %c0_204 = arith.constant 0 : index
    %c0_205 = arith.constant 0 : index
    %248 = vector.load %arg6[%c11_203, %c0_204, %c0_205] : memref<12x1x128xf32, #tpu.memory_space<vmem>>, vector<1x1x128xf32>
    %249 = vector.shape_cast %248 : vector<1x1x128xf32> to vector<1x128xf32>
    %250 = arith.truncf %241 : vector<16x384xf32> to vector<16x384xbf16>
    %cst_206 = arith.constant dense<0.000000e+00> : vector<16x128xf32>
    %251 = tpu.matmul %250, %243, %cst_206 {dimension_numbers = #tpu.dot_dimension_numbers<[1], [0], [0], [1], [0, 0, 1, 1], [], []>} : vector<16x384xbf16>, vector<384x128xbf16>, vector<16x128xf32> -> vector<16x128xf32>
    %252 = vector.broadcast %245 : vector<1x128xf32> to vector<16x128xf32>
    %253 = arith.addf %251, %252 : vector<16x128xf32>
    %cst_207 = arith.constant 0.000000e+00 : f32
    %254 = vector.broadcast %cst_207 : f32 to vector<16x128xf32>
    %255 = arith.maximumf %253, %254 : vector<16x128xf32>
    %256 = arith.truncf %255 : vector<16x128xf32> to vector<16x128xbf16>
    %cst_208 = arith.constant dense<0.000000e+00> : vector<16x128xf32>
    %257 = tpu.matmul %256, %247, %cst_208 {dimension_numbers = #tpu.dot_dimension_numbers<[1], [0], [0], [1], [0, 0, 1, 1], [], []>} : vector<16x128xbf16>, vector<128x128xbf16>, vector<16x128xf32> -> vector<16x128xf32>
    %258 = vector.broadcast %249 : vector<1x128xf32> to vector<16x128xf32>
    %259 = arith.addf %257, %258 : vector<16x128xf32>
    %c1_209 = arith.constant 1 : index
    %c0_210 = arith.constant 0 : index
    %c0_211 = arith.constant 0 : index
    %260 = vector.load %arg7[%c1_209, %c0_210, %c0_211] : memref<2x16x128xf32, #tpu.memory_space<vmem>>, vector<1x16x128xf32>
    %261 = vector.shape_cast %260 : vector<1x16x128xf32> to vector<16x128xf32>
    %262 = vector.shape_cast %259 : vector<16x128xf32> to vector<1x16x128xf32>
    tpu.vector_store %arg7[%c1_209, %c0_210, %c0_211], %262 {strides = array<i32>} : memref<2x16x128xf32, #tpu.memory_space<vmem>>, vector<1x16x128xf32>,
    %c1_212 = arith.constant 1 : index
    %c0_213 = arith.constant 0 : index
    %c0_214 = arith.constant 0 : index
    %263 = vector.load %arg8[%c1_212, %c0_213, %c0_214] : memref<2x8x128xf32, #tpu.memory_space<vmem>>, vector<1x8x128xf32>
    %264 = vector.shape_cast %263 : vector<1x8x128xf32> to vector<8x128xf32>
    %265 = vector.shape_cast %240 : vector<8x128xf32> to vector<1x8x128xf32>
    tpu.vector_store %arg8[%c1_212, %c0_213, %c0_214], %265 {strides = array<i32>} : memref<2x8x128xf32, #tpu.memory_space<vmem>>, vector<1x8x128xf32>,
    return
  }
}

</mosaic_0001>

<bundles_post_ra>
// kernel: _gin_vcg_core.1
= control target key start
LH: loop header
LB: loop body
LE: loop exit
PB: predicated region body
PF: predicated region fallthrough
CT: control target
= control target key end

     0   :  { %14 = vsyncpa [#allocation3], 0  ;;  %v5758_v1 = vmov 0.0   ;;  %vm5759_vm0 = vmmov 0   ;;  %s7031_s0 = inlined_call_operand.vmem [shape: f32[16,128], index: 0, kind: input, shape index: {}]   ;;  %s7032_s1 = inlined_call_operand.vmem [shape: f32[8,128], index: 1, kind: input, shape index: {}]   ;;  %s7033_s2 = inlined_call_operand.vmem [shape: bf16[2,8,16], index: 2, kind: input, shape index: {}]   ;;  %s7034_s3 = inlined_call_operand.vmem [shape: bf16[2,16,8], index: 3, kind: input, shape index: {}]   ;;  %s7035_s4 = inlined_call_operand.vmem [shape: bf16[10,128,128], index: 4, kind: input, shape index: {}]   ;;  %s7036_s5 = inlined_call_operand.vmem [shape: bf16[2,384,128], index: 5, kind: input, shape index: {}]   ;;  %s7037_s6 = inlined_call_operand.vmem [shape: f32[12,1,128], index: 6, kind: input, shape index: {}]   ;;  %s7038_s7 = inlined_call_operand.hbm [shape: f32[2,16,128], index: 7, kind: output, shape index: {0}]   ;;  %s7039_s8 = inlined_call_operand.hbm [shape: f32[2,8,128], index: 8, kind: output, shape index: {1}]  }
   0x1   :  { %v5450_v0 = vld [vmem:[%s7035_s4] sm:$0xff]   ;;  %4916 = vmatprep.subr.bf16.mxu0 %v5758_v1  ;;  %4936 = vmatprep.subr.bf16.mxu1 %v5758_v1  ;;  %v5451_v2 = vld [vmem:[%s7035_s4 + $0x8] sm:$0xff]   ;;  %v5452_v3 = vld [vmem:[%s7035_s4 + $0x10] sm:$0xff]  }
   0x2   :  { %4917 = vmatpush3.bf16.msra.mxu0 %v5450_v0  ;;  %4932 = vmatprep.mubr.msk.bf16.mxu0 %vm5759_vm0, %v5758_v1  ;;  %v5453_v4 = vld [vmem:[%s7035_s4 + $0x18] sm:$0xff]   ;;  %v5454_v5 = vld [vmem:[%s7035_s4 + $0x20] sm:$0xff]   ;;  %v5455_v6 = vld [vmem:[%s7035_s4 + $0x28] sm:$0xff]  }
   0x3   :  { %4918 = vmatprep.subr.bf16.mxu0 %v5758_v1  ;;  %4952 = vmatprep.mubr.msk.bf16.mxu1 %vm5759_vm0, %v5758_v1  ;;  %v5456_v7 = vld [vmem:[%s7035_s4 + $0x30] sm:$0xff]   ;;  %v5457_v8 = vld [vmem:[%s7035_s4 + $0x38] sm:$0xff]   ;;  %v31_v9 = vld [vmem:[%s7031_s0] sm:$0xff] }
   0x4   :  { %v32_v10 = vld [vmem:[%s7031_s0 + $0x8] sm:$0xff]  ;;  %v5476_v11 = vld [vmem:[%s7035_s4 + $0x40] sm:$0xff]   ;;  %v5480_v15 = vld [vmem:[%s7035_s4 + $0x50] sm:$0xff]  }
   0x5   :  { %v5855_v12 = vpack.c.bf16 %v32_v10, %v31_v9  ;;  %4937 = vmatpush3.bf16.msra.mxu1 %v5476_v11  ;;  %v5478_v13 = vld [vmem:[%s7035_s4 + $0x48] sm:$0xff]   ;;  %v5458_v14 = vld [vmem:[%s7035_s4 + $0x80] sm:$0xff]   ;;  %v5482_v17 = vld [vmem:[%s7035_s4 + $0x58] sm:$0xff]  }
   0x6   :  { %4919 = vmatpush3.bf16.msra.mxu0 %v5451_v2  ;;  %4938 = vmatprep.subr.bf16.mxu1 %v5758_v1  ;;  %v5459_v16 = vld [vmem:[%s7035_s4 + $0x88] sm:$0xff]   ;;  %v5460_v18 = vld [vmem:[%s7035_s4 + $0x90] sm:$0xff]   ;;  %v5484_v19 = vld [vmem:[%s7035_s4 + $0x60] sm:$0xff]  }
   0x7   :  { %4920 = vmatprep.subr.bf16.mxu0 %v5758_v1  ;;  %v5461_v20 = vld [vmem:[%s7035_s4 + $0x98] sm:$0xff]   ;;  %v5486_v21 = vld [vmem:[%s7035_s4 + $0x68] sm:$0xff]   ;;  %v5462_v22 = vld [vmem:[%s7035_s4 + $0xa0] sm:$0xff]  }
   0x8   :  { %v5463_v23 = vld [vmem:[%s7035_s4 + $0xa8] sm:$0xff]   ;;  %v5464_v24 = vld [vmem:[%s7035_s4 + $0xb0] sm:$0xff]   ;;  %v5465_v25 = vld [vmem:[%s7035_s4 + $0xb8] sm:$0xff]  }
   0x9   :  { %4939 = vmatpush3.bf16.msra.mxu1 %v5478_v13  ;;  %v5466_v26 = vld [vmem:[%s7035_s4 + $0x100] sm:$0xff]   ;;  %v5467_v27 = vld [vmem:[%s7035_s4 + $0x108] sm:$0xff]   ;;  %v5468_v28 = vld [vmem:[%s7035_s4 + $0x110] sm:$0xff]  }
   0xa   :  { %4921 = vmatpush3.bf16.msra.mxu0 %v5452_v3  ;;  %4940 = vmatprep.subr.bf16.mxu1 %v5758_v1  ;;  %v5469_v29 = vld [vmem:[%s7035_s4 + $0x118] sm:$0xff]   ;;  %v5470_v30 = vld [vmem:[%s7035_s4 + $0x120] sm:$0xff]   ;;  %v5471_v31 = vld [vmem:[%s7035_s4 + $0x128] sm:$0xff]  }
   0xb   :  { %4922 = vmatprep.subr.bf16.mxu0 %v5758_v1  ;;  %v5472_v32 = vld [vmem:[%s7035_s4 + $0x130] sm:$0xff]   ;;  %v5473_v33 = vld [vmem:[%s7035_s4 + $0x138] sm:$0xff]   ;;  %v33_v34 = vld [vmem:[%s7032_s1] sm:$0xff] }
   0xc   :  { %v5474_v35 = vld [vmem:[%s7035_s4 + $0x180] sm:$0xff]   ;;  %v5954_v36 = vpack.c.bf16 %v33_v34, %v33_v34  ;;  %v5475_v37 = vld [vmem:[%s7035_s4 + $0x188] sm:$0xff]   ;;  %v5477_v38 = vld [vmem:[%s7035_s4 + $0x190] sm:$0xff]  }
   0xd   :  { %4941 = vmatpush3.bf16.msra.mxu1 %v5480_v15  ;;  %v5479_v39 = vld [vmem:[%s7035_s4 + $0x198] sm:$0xff]   ;;  %v5481_v40 = vld [vmem:[%s7035_s4 + $0x1a0] sm:$0xff]   ;;  %v5483_v41 = vld [vmem:[%s7035_s4 + $0x1a8] sm:$0xff]  }
   0xe   :  { %4923 = vmatpush3.bf16.msra.mxu0 %v5453_v4  ;;  %4942 = vmatprep.subr.bf16.mxu1 %v5758_v1  ;;  %v5485_v42 = vld [vmem:[%s7035_s4 + $0x1b0] sm:$0xff]   ;;  %v5487_v44 = vld [vmem:[%s7035_s4 + $0x1b8] sm:$0xff]  }
   0xf   :  { %4924 = vmatprep.subr.bf16.mxu0 %v5758_v1  ;;  %v5488_v43 = vld [vmem:[%s7035_s4 + $0x70] sm:$0xff]   ;;  %v5489_v45 = vld [vmem:[%s7035_s4 + $0x78] sm:$0xff]  }
  0x11   :  { %4943 = vmatpush3.bf16.msra.mxu1 %v5482_v17 }
  0x12   :  { %4925 = vmatpush3.bf16.msra.mxu0 %v5454_v5  ;;  %4944 = vmatprep.subr.bf16.mxu1 %v5758_v1 }
  0x13   :  { %4926 = vmatprep.subr.bf16.mxu0 %v5758_v1 }
  0x15   :  { %4945 = vmatpush3.bf16.msra.mxu1 %v5484_v19 }
  0x16   :  { %4927 = vmatpush3.bf16.msra.mxu0 %v5455_v6  ;;  %4946 = vmatprep.subr.bf16.mxu1 %v5758_v1 }
  0x17   :  { %4928 = vmatprep.subr.bf16.mxu0 %v5758_v1 }
  0x19   :  { %4947 = vmatpush3.bf16.msra.mxu1 %v5486_v21 }
  0x1a   :  { %4929 = vmatpush3.bf16.msra.mxu0 %v5456_v7  ;;  %4948 = vmatprep.subr.bf16.mxu1 %v5758_v1 }
  0x1b   :  { %4930 = vmatprep.subr.bf16.mxu0 %v5758_v1 }
  0x1d   :  { %4949 = vmatpush3.bf16.msra.mxu1 %v5488_v43 }
  0x1e   :  { %4931 = vmatpush3.bf16.msra.mxu0 %v5457_v8  ;;  %4950 = vmatprep.subr.bf16.mxu1 %v5758_v1 }
  0x1f   :  { %4956 = vmatprep.subr.bf16.mxu0 %v5758_v1 }
  0x21   :  { %4933 = vmatmul.mubr.bf16.vlgmr.msra.gmra.mrb[0].mxu0 %v5855_v12  ;;  %4951 = vmatpush3.bf16.msra.mxu1 %v5489_v45 }
  0x22   :  { %4957 = vmatpush3.bf16.msra.mxu0 %v5458_v14  ;;  %4972 = vmatprep.mubr.msk.bf16.mxu0 %vm5759_vm0, %v5758_v1 }
  0x23   :  { %4958 = vmatprep.subr.bf16.mxu0 %v5758_v1  ;;  %4976 = vmatprep.subr.bf16.mxu1 %v5758_v1 }
  0x26   :  { %4959 = vmatpush3.bf16.msra.mxu0 %v5459_v16 }
  0x27   :  { %4960 = vmatprep.subr.bf16.mxu0 %v5758_v1 }
  0x2a   :  { %4961 = vmatpush3.bf16.msra.mxu0 %v5460_v18 }
  0x2b   :  { %4962 = vmatprep.subr.bf16.mxu0 %v5758_v1 }
  0x2e   :  { %4963 = vmatpush3.bf16.msra.mxu0 %v5461_v20 }
  0x2f   :  { %4964 = vmatprep.subr.bf16.mxu0 %v5758_v1 }
  0x32   :  { %4965 = vmatpush3.bf16.msra.mxu0 %v5462_v22 }
  0x33   :  { %4966 = vmatprep.subr.bf16.mxu0 %v5758_v1 }
  0x36   :  { %4967 = vmatpush3.bf16.msra.mxu0 %v5463_v23 }
  0x37   :  { %4968 = vmatprep.subr.bf16.mxu0 %v5758_v1 }
  0x3a   :  { %4969 = vmatpush3.bf16.msra.mxu0 %v5464_v24 }
  0x3b   :  { %4970 = vmatprep.subr.bf16.mxu0 %v5758_v1 }
  0x3e   :  { %4971 = vmatpush3.bf16.msra.mxu0 %v5465_v25 }
  0x3f   :  { %4996 = vmatprep.subr.bf16.mxu0 %v5758_v1 }
  0x41   :  { %4973 = vmatmul.mubr.bf16.vlgmr.msra.gmra.mrb[4].mxu0 %v5855_v12 }
  0x42   :  { %4997 = vmatpush3.bf16.msra.mxu0 %v5466_v26  ;;  %5012 = vmatprep.mubr.msk.bf16.mxu0 %vm5759_vm0, %v5758_v1 }
  0x43   :  { %4998 = vmatprep.subr.bf16.mxu0 %v5758_v1 }
  0x46   :  { %4999 = vmatpush3.bf16.msra.mxu0 %v5467_v27 }
  0x47   :  { %5000 = vmatprep.subr.bf16.mxu0 %v5758_v1 }
  0x4a   :  { %5001 = vmatpush3.bf16.msra.mxu0 %v5468_v28 }
  0x4b   :  { %5002 = vmatprep.subr.bf16.mxu0 %v5758_v1 }
  0x4e   :  { %5003 = vmatpush3.bf16.msra.mxu0 %v5469_v29 }
  0x4f   :  { %5004 = vmatprep.subr.bf16.mxu0 %v5758_v1 }
  0x52   :  { %5005 = vmatpush3.bf16.msra.mxu0 %v5470_v30 }
  0x53   :  { %5006 = vmatprep.subr.bf16.mxu0 %v5758_v1 }
  0x56   :  { %5007 = vmatpush3.bf16.msra.mxu0 %v5471_v31 }
  0x57   :  { %5008 = vmatprep.subr.bf16.mxu0 %v5758_v1 }
  0x5a   :  { %5009 = vmatpush3.bf16.msra.mxu0 %v5472_v32 }
  0x5b   :  { %5010 = vmatprep.subr.bf16.mxu0 %v5758_v1 }
  0x5e   :  { %5011 = vmatpush3.bf16.msra.mxu0 %v5473_v33 }
  0x5f   :  { %5036 = vmatprep.subr.bf16.mxu0 %v5758_v1 }
  0x61   :  { %5013 = vmatmul.mubr.bf16.vlgmr.msra.gmra.mrb[8].mxu0 %v5954_v36 }
  0x62   :  { %5037 = vmatpush3.bf16.msra.mxu0 %v5474_v35  ;;  %5052 = vmatprep.mubr.msk.bf16.mxu0 %vm5759_vm0, %v5758_v1 }
  0x63   :  { %5038 = vmatprep.subr.bf16.mxu0 %v5758_v1 }
  0x66   :  { %5039 = vmatpush3.bf16.msra.mxu0 %v5475_v37 }
  0x67   :  { %5040 = vmatprep.subr.bf16.mxu0 %v5758_v1 }
  0x6a   :  { %5041 = vmatpush3.bf16.msra.mxu0 %v5477_v38 }
  0x6b   :  { %5042 = vmatprep.subr.bf16.mxu0 %v5758_v1 }
  0x6e   :  { %5043 = vmatpush3.bf16.msra.mxu0 %v5479_v39 }
  0x6f   :  { %5044 = vmatprep.subr.bf16.mxu0 %v5758_v1 }
  0x72   :  { %5045 = vmatpush3.bf16.msra.mxu0 %v5481_v40 }
  0x73   :  { %5046 = vmatprep.subr.bf16.mxu0 %v5758_v1 }
  0x76   :  { %5047 = vmatpush3.bf16.msra.mxu0 %v5483_v41 }
  0x77   :  { %5048 = vmatprep.subr.bf16.mxu0 %v5758_v1 }
  0x7a   :  { %5049 = vmatpush3.bf16.msra.mxu0 %v5485_v42 }
  0x7b   :  { %5050 = vmatprep.subr.bf16.mxu0 %v5758_v1 }
  0x7e   :  { %5051 = vmatpush3.bf16.msra.mxu0 %v5487_v44 }
  0x7f   :  { %5076 = vmatprep.subr.bf16.mxu0 %v5758_v1 }
  0x81   :  { %5053 = vmatmul.mubr.bf16.vlgmr.msra.gmra.mrb[12].mxu0 %v5954_v36 }
  0x82   :  { %5078 = vmatprep.mubr.msk.bf16.mxu0 %vm5759_vm0, %v5758_v1 }
  0x83   :  { %15 = vsyncpa [#allocation5], 0  ;;  %v3909_v46 = vld [vmem:[%s7037_s6] ss:$0 sm:$0xff]  ;;  %v5491_v57 = vld [vmem:[%s7035_s4 + $0xc8] sm:$0xff]   ;;  %vm954_vm1 = vcmask 130048  }
  0x84   :  { %v5490_v55 = vld [vmem:[%s7035_s4 + $0xc0] sm:$0xff]   ;;  %v5492_v58 = vld [vmem:[%s7035_s4 + $0xd0] sm:$0xff]   ;;  %v5493_v59 = vld [vmem:[%s7035_s4 + $0xd8] sm:$0xff]   ;;  %vm1056_vm2 = vcmask 1043456   ;;  %vm1052_vm3 = vcmask 64512  }
  0x85   :  { %v5494_v60 = vld [vmem:[%s7035_s4 + $0xe0] sm:$0xff]   ;;  %v5495_v61 = vld [vmem:[%s7035_s4 + $0xe8] sm:$0xff]   ;;  %v5496_v63 = vld [vmem:[%s7035_s4 + $0xf0] sm:$0xff]  }
  0x86   :  { %v3961_v62 = vld [vmem:[%s7037_s6 + $0x2] ss:$0 sm:$0xff]  ;;  %v5497_v5 = vld [vmem:[%s7035_s4 + $0xf8] sm:$0xff]   ;;  %v5499_v13 = vld [vmem:[%s7035_s4 + $0x148] sm:$0xff]  }
  0x87   :  { %v5498_v10 = vld [vmem:[%s7035_s4 + $0x140] sm:$0xff]   ;;  %v5500_v14 = vld [vmem:[%s7035_s4 + $0x150] sm:$0xff]   ;;  %v5501_v15 = vld [vmem:[%s7035_s4 + $0x158] sm:$0xff]  }
  0x88   :  { %v5502_v16 = vld [vmem:[%s7035_s4 + $0x160] sm:$0xff]   ;;  %v5503_v17 = vld [vmem:[%s7035_s4 + $0x168] sm:$0xff]   ;;  %v5504_v18 = vld [vmem:[%s7035_s4 + $0x170] sm:$0xff]  }
  0x89   :  { %v4013_v19 = vld [vmem:[%s7037_s6 + $0x4] ss:$0 sm:$0xff]  ;;  %v5505_v24 = vld [vmem:[%s7035_s4 + $0x178] sm:$0xff]   ;;  %v5507_v29 = vld [vmem:[%s7035_s4 + $0x1c8] sm:$0xff]  }
  0x8a   :  { %v5506_v28 = vld [vmem:[%s7035_s4 + $0x1c0] sm:$0xff]   ;;  %v5508_v30 = vld [vmem:[%s7035_s4 + $0x1d0] sm:$0xff]   ;;  %v5509_v31 = vld [vmem:[%s7035_s4 + $0x1d8] sm:$0xff]  }
  0x8b   :  { %v5510_v32 = vld [vmem:[%s7035_s4 + $0x1e0] sm:$0xff]   ;;  %v5511_v33 = vld [vmem:[%s7035_s4 + $0x1e8] sm:$0xff]   ;;  %v5512_v35 = vld [vmem:[%s7035_s4 + $0x1f0] sm:$0xff]  }
  0x8c   :  { %v4065_v34 = vld [vmem:[%s7037_s6 + $0x6] ss:$0 sm:$0xff]  ;;  %v5513_v41 = vld [vmem:[%s7035_s4 + $0x1f8] sm:$0xff]   ;;  %v3918_v45 = vld [vmem:[%s7037_s6 + $0x1] ss:$0 sm:$0xff] }
  0xf4   :  { %v159_v47 = vpop.f32.mrb[0].mxu0 }
  0xf5   :  { %v160_v48 = vadd.f32 %v3909_v46, %v159_v47  ;;  %v4934_v49 = vpop.f32.mrb[1].mxu0 }
  0xf6   :  { %v162_v50 = vpop.f32.mrb[2].mxu0 }
  0xf7   :  { %v166_v51 = vmax.f32 %v160_v48, 0.0  ;;  %v163_v52 = vadd.f32 %v3909_v46, %v162_v50  ;;  %v4935_v53 = vpop.f32.mrb[3].mxu0 }
  0xf8   :  { %v952_v53 = vld [vmem:[%s7033_s2] sm:$0xf] }
  0xf9   :  { %v167_v54 = vmax.f32 %v163_v52, 0.0 }
  0xfb   :  { %v168_v56 = vpack.c.bf16 %v167_v54, %v166_v51  ;;  %v3970_v54 = vld [vmem:[%s7037_s6 + $0x3] ss:$0 sm:$0xff] }
  0xfd   :  { %4953 = vmatmul.mubr.bf16.vlgmr.msra.gmra.mrb[0].mxu1 %v168_v56 }
  0xfe   :  { %4977 = vmatpush3.bf16.msra.mxu1 %v5490_v55  ;;  %4992 = vmatprep.mubr.msk.bf16.mxu1 %vm5759_vm0, %v5758_v1 }
  0xff   :  { %4978 = vmatprep.subr.bf16.mxu1 %v5758_v1 }
 0x102   :  { %4979 = vmatpush3.bf16.msra.mxu1 %v5491_v57 }
 0x103   :  { %4980 = vmatprep.subr.bf16.mxu1 %v5758_v1 }
 0x106   :  { %4981 = vmatpush3.bf16.msra.mxu1 %v5492_v58 }
 0x107   :  { %4982 = vmatprep.subr.bf16.mxu1 %v5758_v1 }
 0x10a   :  { %4983 = vmatpush3.bf16.msra.mxu1 %v5493_v59 }
 0x10b   :  { %4984 = vmatprep.subr.bf16.mxu1 %v5758_v1 }
 0x10e   :  { %4985 = vmatpush3.bf16.msra.mxu1 %v5494_v60 }
 0x10f   :  { %4986 = vmatprep.subr.bf16.mxu1 %v5758_v1 }
 0x112   :  { %4987 = vmatpush3.bf16.msra.mxu1 %v5495_v61 }
 0x113   :  { %4988 = vmatprep.subr.bf16.mxu1 %v5758_v1 }
 0x114   :  { %v390_v0 = vpop.f32.mrb[4].mxu0 }
 0x115   :  { %v391_v2 = vadd.f32 %v3961_v62, %v390_v0  ;;  %v4974_v3 = vpop.f32.mrb[5].mxu0 }
 0x116   :  { %v393_v4 = vpop.f32.mrb[6].mxu0  ;;  %4989 = vmatpush3.bf16.msra.mxu1 %v5496_v63  ;;  %v4022_v63 = vld [vmem:[%s7037_s6 + $0x5] ss:$0 sm:$0xff] }
 0x117   :  { %v394_v6 = vadd.f32 %v3961_v62, %v393_v4  ;;  %v4975_v7 = vpop.f32.mrb[7].mxu0  ;;  %4990 = vmatprep.subr.bf16.mxu1 %v5758_v1  ;;  %v397_v8 = vmax.f32 %v391_v2, 0.0  ;;  %v4084_v62 = vld [vmem:[%s7033_s2 + $0x4] sm:$0xf] }
 0x118   :  { %v5514_v7 = vld [vmem:[%s7036_s5 + $0x40] sm:$0xff]  }
 0x119   :  { %v398_v9 = vmax.f32 %v394_v6, 0.0 }
 0x11a   :  { %4991 = vmatpush3.bf16.msra.mxu1 %v5497_v5 }
 0x11b   :  { %v399_v11 = vpack.c.bf16 %v398_v9, %v397_v8  ;;  %5016 = vmatprep.subr.bf16.mxu1 %v5758_v1  ;;  %v5515_v9 = vld [vmem:[%s7034_s3] sm:$0xff]  }
 0x11d   :  { %4993 = vmatmul.mubr.bf16.vlgmr.msra.gmra.mrb[4].mxu1 %v399_v11  ;;  %v5517_v11 = vld [vmem:[%s7036_s5 + $0x48] sm:$0xff]  }
 0x11e   :  { %5017 = vmatpush3.bf16.msra.mxu1 %v5498_v10  ;;  %5032 = vmatprep.mubr.msk.bf16.mxu1 %vm5759_vm0, %v5758_v1  ;;  %v5516_v10 = vld [vmem:[%s7036_s5] sm:$0xff]  }
 0x11f   :  { %5018 = vmatprep.subr.bf16.mxu1 %v5758_v1 }
 0x122   :  { %5019 = vmatpush3.bf16.msra.mxu1 %v5499_v13  ;;  %v5518_v13 = vld [vmem:[%s7036_s5 + $0x8] sm:$0xff]  }
 0x123   :  { %5020 = vmatprep.subr.bf16.mxu1 %v5758_v1 }
 0x126   :  { %5021 = vmatpush3.bf16.msra.mxu1 %v5500_v14  ;;  %v5520_v14 = vld [vmem:[%s7036_s5 + $0x50] sm:$0xff]  }
 0x127   :  { %5022 = vmatprep.subr.bf16.mxu1 %v5758_v1 }
 0x12a   :  { %5023 = vmatpush3.bf16.msra.mxu1 %v5501_v15  ;;  %v5521_v15 = vld [vmem:[%s7036_s5 + $0x10] sm:$0xff]  }
 0x12b   :  { %5024 = vmatprep.subr.bf16.mxu1 %v5758_v1 }
 0x12e   :  { %5025 = vmatpush3.bf16.msra.mxu1 %v5502_v16  ;;  %v5523_v16 = vld [vmem:[%s7036_s5 + $0x58] sm:$0xff]  }
 0x12f   :  { %5026 = vmatprep.subr.bf16.mxu1 %v5758_v1 }
 0x132   :  { %5027 = vmatpush3.bf16.msra.mxu1 %v5503_v17  ;;  %v5524_v17 = vld [vmem:[%s7036_s5 + $0x18] sm:$0xff]  }
 0x133   :  { %5028 = vmatprep.subr.bf16.mxu1 %v5758_v1 }
 0x134   :  { %v622_v20 = vpop.f32.mrb[8].mxu0 }
 0x135   :  { %v623_v21 = vadd.f32 %v4013_v19, %v622_v20  ;;  %v5014_v22 = vpop.f32.mrb[9].mxu0  ;;  %v5527_v19 = vld [vmem:[%s7036_s5 + $0x20] sm:$0xff]   ;;  %v5529_v20 = vld [vmem:[%s7036_s5 + $0x68] sm:$0xff]  }
 0x136   :  { %5029 = vmatpush3.bf16.msra.mxu1 %v5504_v18  ;;  %v625_v23 = vpop.f32.mrb[10].mxu0  ;;  %v5526_v18 = vld [vmem:[%s7036_s5 + $0x60] sm:$0xff]   ;;  %v5532_v22 = vld [vmem:[%s7036_s5 + $0x70] sm:$0xff]  }
 0x137   :  { %v628_v25 = vmax.f32 %v623_v21, 0.0  ;;  %5030 = vmatprep.subr.bf16.mxu1 %v5758_v1  ;;  %v5015_v26 = vpop.f32.mrb[11].mxu0  ;;  %v5530_v21 = vld [vmem:[%s7036_s5 + $0x28] sm:$0xff]   ;;  %v4074_v23 = vld [vmem:[%s7037_s6 + $0x7] ss:$0 sm:$0xff] }
 0x139   :  { %v629_v27 = vpack.c.bf16 %v628_v25, %v628_v25  ;;  %v5535_v25 = vld [vmem:[%s7036_s5 + $0x78] sm:$0xff]  }
 0x13a   :  { %5031 = vmatpush3.bf16.msra.mxu1 %v5505_v24  ;;  %v5533_v24 = vld [vmem:[%s7036_s5 + $0x30] sm:$0xff]  }
 0x13b   :  { %5056 = vmatprep.subr.bf16.mxu1 %v5758_v1 }
 0x13d   :  { %5033 = vmatmul.mubr.bf16.vlgmr.msra.gmra.mrb[8].mxu1 %v629_v27 }
 0x13e   :  { %5057 = vmatpush3.bf16.msra.mxu1 %v5506_v28  ;;  %5072 = vmatprep.mubr.msk.bf16.mxu1 %vm5759_vm0, %v5758_v1 }
 0x13f   :  { %5058 = vmatprep.subr.bf16.mxu1 %v5758_v1 }
 0x142   :  { %5059 = vmatpush3.bf16.msra.mxu1 %v5507_v29 }
 0x143   :  { %5060 = vmatprep.subr.bf16.mxu1 %v5758_v1 }
 0x146   :  { %5061 = vmatpush3.bf16.msra.mxu1 %v5508_v30  ;;  %v5536_v30 = vld [vmem:[%s7036_s5 + $0x38] sm:$0xff]  }
 0x147   :  { %5062 = vmatprep.subr.bf16.mxu1 %v5758_v1 }
 0x14a   :  { %5063 = vmatpush3.bf16.msra.mxu1 %v5509_v31 }
 0x14b   :  { %5064 = vmatprep.subr.bf16.mxu1 %v5758_v1 }
 0x14e   :  { %5065 = vmatpush3.bf16.msra.mxu1 %v5510_v32 }
 0x14f   :  { %5066 = vmatprep.subr.bf16.mxu1 %v5758_v1 }
 0x152   :  { %5067 = vmatpush3.bf16.msra.mxu1 %v5511_v33 }
 0x153   :  { %5068 = vmatprep.subr.bf16.mxu1 %v5758_v1 }
 0x154   :  { %v850_v37 = vpop.f32.mrb[12].mxu0 }
 0x155   :  { %v851_v38 = vadd.f32 %v4065_v34, %v850_v37  ;;  %v5054_v39 = vpop.f32.mrb[13].mxu0  ;;  %v5519_v34 = vld [vmem:[%s7034_s3 + $0x8] sm:$0xff]  }
 0x156   :  { %5069 = vmatpush3.bf16.msra.mxu1 %v5512_v35  ;;  %v853_v40 = vpop.f32.mrb[14].mxu0  ;;  %v5522_v35 = vld [vmem:[%s7036_s5 + $0x80] sm:$0xff]   ;;  %v5525_v37 = vld [vmem:[%s7036_s5 + $0x88] sm:$0xff]   ;;  %v5531_v39 = vld [vmem:[%s7036_s5 + $0x98] sm:$0xff]  }
 0x157   :  { %v856_v42 = vmax.f32 %v851_v38, 0.0  ;;  %v5055_v43 = vpop.f32.mrb[15].mxu0  ;;  %5070 = vmatprep.subr.bf16.mxu1 %v5758_v1  ;;  %v5528_v38 = vld [vmem:[%s7036_s5 + $0x90] sm:$0xff]   ;;  %v5534_v40 = vld [vmem:[%s7036_s5 + $0xa0] sm:$0xff]  }
 0x158   :  { %v5539_v43 = vld [vmem:[%s7036_s5 + $0xb8] sm:$0xff]  }
 0x159   :  { %v857_v44 = vpack.c.bf16 %v856_v42, %v856_v42  ;;  %v5538_v42 = vld [vmem:[%s7036_s5 + $0xb0] sm:$0xff]  }
 0x15a   :  { %5071 = vmatpush3.bf16.msra.mxu1 %v5513_v41  ;;  %v5537_v41 = vld [vmem:[%s7036_s5 + $0xa8] sm:$0xff]  }
 0x15b   :  { %5082 = vmatprep.subr.bf16.mxu1 %v5758_v1 }
 0x15d   :  { %5073 = vmatmul.mubr.bf16.vlgmr.msra.gmra.mrb[12].mxu1 %v857_v44 }
 0x15e   :  { %5084 = vmatprep.mubr.msk.bf16.mxu1 %vm5759_vm0, %v5758_v1 }
 0x1d0   :  { %v257_v46 = vpop.f32.mrb[0].mxu1 }
 0x1d1   :  { %v4954_v47 = vpop.f32.mrb[1].mxu1  ;;  %v258_v49 = vadd.f32 %v3918_v45, %v257_v46 }
 0x1d2   :  { %v260_v48 = vpop.f32.mrb[2].mxu1  ;;  %v5540_v47 = vld [vmem:[%s7035_s4 + $0x200] sm:$0xff]  }
 0x1d3   :  { %v261_v50 = vadd.f32 %v3918_v45, %v260_v48  ;;  %v4955_v51 = vpop.f32.mrb[3].mxu1 }
 0x1d4   :  { %v5542_v51 = vld [vmem:[%s7035_s4 + $0x210] sm:$0xff]  }
 0x1d5   :  { %v953_v52 = vpack.c.bf16 %v261_v50, %v258_v49  ;;  %v5541_v50 = vld [vmem:[%s7035_s4 + $0x208] sm:$0xff]  }
 0x1d7   :  { %5077 = vmatpush3.bf16.msra.mxu0 %v953_v52  ;;  %v5544_v52 = vld [vmem:[%s7035_s4 + $0x220] sm:$0xff]  }
 0x1d8   :  { %5088 = vmatprep.subr.bf16.mxu0 %v5758_v1 }
 0x1da   :  { %5079 = vmatmul.mubr.msk.bf16.vlgmr.msra.gmra.mrb[16].mxu0 %vm954_vm1, %v952_v53 }
 0x1db   :  { %5090 = vmatprep.mubr.msk.bf16.mxu0 %vm5759_vm0, %v5758_v1 }
 0x1f0   :  { %v488_v55 = vpop.f32.mrb[4].mxu1 }
 0x1f1   :  { %v4994_v56 = vpop.f32.mrb[5].mxu1  ;;  %v489_v58 = vadd.f32 %v3970_v54, %v488_v55 }
 0x1f2   :  { %v491_v57 = vpop.f32.mrb[6].mxu1 }
 0x1f3   :  { %v492_v59 = vadd.f32 %v3970_v54, %v491_v57  ;;  %v4995_v60 = vpop.f32.mrb[7].mxu1 }
 0x1f5   :  { %v1000_v61 = vpack.c.bf16 %v492_v59, %v489_v58 }
 0x1f7   :  { %5083 = vmatpush3.bf16.msra.mxu1 %v1000_v61 }
 0x1f8   :  { %5094 = vmatprep.subr.bf16.mxu1 %v5758_v1 }
 0x1fa   :  { %5085 = vmatmul.mubr.msk.bf16.vlgmr.msra.gmra.mrb[16].mxu1 %vm954_vm1, %v4084_v62 }
 0x1fb   :  { %5096 = vmatprep.mubr.msk.bf16.mxu1 %vm5759_vm0, %v5758_v1 }
 0x210   :  { %v718_v0 = vpop.f32.mrb[8].mxu1 }
 0x211   :  { %v719_v2 = vadd.f32 %v4022_v63, %v718_v0  ;;  %v5034_v3 = vpop.f32.mrb[9].mxu1  ;;  %v5545_v63 = vld [vmem:[%s7035_s4 + $0x228] sm:$0xff]   ;;  %v5546_v0 = vld [vmem:[%s7036_s5 + $0x100] sm:$0xff]  }
 0x212   :  { %v721_v4 = vpop.f32.mrb[10].mxu1  ;;  %v5547_v3 = vld [vmem:[%s7035_s4 + $0x230] sm:$0xff]  }
 0x213   :  { %v1046_v5 = vpack.c.bf16 %v719_v2, %v719_v2  ;;  %v5035_v6 = vpop.f32.mrb[11].mxu1  ;;  %v5548_v2 = vld [vmem:[%s7036_s5 + $0xc0] sm:$0xff]  }
 0x215   :  { %v1058_v8 = vsel %vm1056_vm2, %v1046_v5, 0 }
 0x216   :  { %5089 = vmatpush3.bf16.msra.mxu0 %v1058_v8 }
 0x217   :  { %4676 = vmatprep.subr.bf16.mxu0 %v5514_v7 }
 0x219   :  { %5091 = vmatmul.mubr.msk.bf16.vlgmr.msra.gmra.mrb[20].mxu0 %vm1052_vm3, %v5515_v9  ;;  %v5549_v9 = vld [vmem:[%s7036_s5 + $0x108] sm:$0xff]  }
 0x21a   :  { %4677 = vmatpush3.bf16.msra.mxu0 %v5516_v10  ;;  %v5550_v10 = vld [vmem:[%s7035_s4 + $0x238] sm:$0xff]  }
 0x21b   :  { %4678 = vmatprep.subr.bf16.mxu0 %v5517_v11  ;;  %v5551_v11 = vld [vmem:[%s7036_s5 + $0xc8] sm:$0xff]  }
 0x21e   :  { %4679 = vmatpush3.bf16.msra.mxu0 %v5518_v13  ;;  %v5552_v13 = vld [vmem:[%s7036_s5 + $0x110] sm:$0xff]  }
 0x21f   :  { %4680 = vmatprep.subr.bf16.mxu0 %v5520_v14  ;;  %v5553_v14 = vld [vmem:[%s7036_s5 + $0xd0] sm:$0xff]  }
 0x222   :  { %4681 = vmatpush3.bf16.msra.mxu0 %v5521_v15  ;;  %v5555_v15 = vld [vmem:[%s7036_s5 + $0x118] sm:$0xff]  }
 0x223   :  { %4682 = vmatprep.subr.bf16.mxu0 %v5523_v16  ;;  %v5556_v16 = vld [vmem:[%s7036_s5 + $0xd8] sm:$0xff]  }
 0x226   :  { %4683 = vmatpush3.bf16.msra.mxu0 %v5524_v17  ;;  %v5558_v17 = vld [vmem:[%s7036_s5 + $0x120] sm:$0xff]  }
 0x227   :  { %4684 = vmatprep.subr.bf16.mxu0 %v5526_v18  ;;  %v5559_v18 = vld [vmem:[%s7036_s5 + $0xe0] sm:$0xff]  }
 0x22a   :  { %4685 = vmatpush3.bf16.msra.mxu0 %v5527_v19  ;;  %v5561_v19 = vld [vmem:[%s7036_s5 + $0x128] sm:$0xff]  }
 0x22b   :  { %4686 = vmatprep.subr.bf16.mxu0 %v5529_v20  ;;  %v5562_v20 = vld [vmem:[%s7036_s5 + $0xe8] sm:$0xff]  }
 0x22e   :  { %4687 = vmatpush3.bf16.msra.mxu0 %v5530_v21  ;;  %v5564_v21 = vld [vmem:[%s7036_s5 + $0x130] sm:$0xff]  }
 0x22f   :  { %4688 = vmatprep.subr.bf16.mxu0 %v5532_v22  ;;  %v5565_v22 = vld [vmem:[%s7036_s5 + $0xf0] sm:$0xff]  }
 0x230   :  { %v946_v26 = vpop.f32.mrb[12].mxu1 }
 0x231   :  { %v947_v27 = vadd.f32 %v4074_v23, %v946_v26  ;;  %v5074_v28 = vpop.f32.mrb[13].mxu1  ;;  %v5567_v23 = vld [vmem:[%s7036_s5 + $0x138] sm:$0xff]  }
 0x232   :  { %v949_v29 = vpop.f32.mrb[14].mxu1  ;;  %4689 = vmatpush3.bf16.msra.mxu0 %v5533_v24  ;;  %v5568_v24 = vld [vmem:[%s7036_s5 + $0xf8] sm:$0xff]  }
 0x233   :  { %v1104_v31 = vpack.c.bf16 %v947_v27, %v947_v27  ;;  %v5075_v32 = vpop.f32.mrb[15].mxu1  ;;  %4690 = vmatprep.subr.bf16.mxu0 %v5535_v25 }
 0x235   :  { %v1114_v33 = vsel %vm1056_vm2, %v1104_v31, 0 }
 0x236   :  { %5095 = vmatpush3.bf16.msra.mxu1 %v1114_v33  ;;  %4691 = vmatpush3.bf16.msra.mxu0 %v5536_v30  ;;  %v4110_v30 = vld [vmem:[%s7037_s6 + $0x8] ss:$0 sm:$0xff] }
 0x237   :  { %5100 = vmatprep.subr.bf16.mxu1 %v5758_v1  ;;  %5120 = vmatprep.subr.bf16.mxu0 %v5758_v1 }
 0x239   :  { %5097 = vmatmul.mubr.msk.bf16.vlgmr.msra.gmra.mrb[20].mxu1 %vm1052_vm3, %v5519_v34 }
 0x23a   :  { %5101 = vmatpush3.bf16.msra.mxu1 %v5522_v35  ;;  %5116 = vmatprep.mubr.msk.bf16.mxu1 %vm5759_vm0, %v5758_v1 }
 0x23b   :  { %5102 = vmatprep.subr.bf16.mxu1 %v5758_v1 }
 0x23e   :  { %5103 = vmatpush3.bf16.msra.mxu1 %v5525_v37 }
 0x23f   :  { %5104 = vmatprep.subr.bf16.mxu1 %v5758_v1 }
 0x242   :  { %5105 = vmatpush3.bf16.msra.mxu1 %v5528_v38 }
 0x243   :  { %5106 = vmatprep.subr.bf16.mxu1 %v5758_v1 }
 0x246   :  { %5107 = vmatpush3.bf16.msra.mxu1 %v5531_v39 }
 0x247   :  { %5108 = vmatprep.subr.bf16.mxu1 %v5758_v1 }
 0x24a   :  { %5109 = vmatpush3.bf16.msra.mxu1 %v5534_v40  ;;  %v5557_v40 = vld [vmem:[%s7036_s5 + $0x148] sm:$0xff]  }
 0x24b   :  { %5110 = vmatprep.subr.bf16.mxu1 %v5758_v1 }
 0x24e   :  { %5111 = vmatpush3.bf16.msra.mxu1 %v5537_v41  ;;  %v5560_v41 = vld [vmem:[%s7036_s5 + $0x150] sm:$0xff]  }
 0x24f   :  { %5112 = vmatprep.subr.bf16.mxu1 %v5758_v1 }
 0x252   :  { %5113 = vmatpush3.bf16.msra.mxu1 %v5538_v42  ;;  %v5563_v42 = vld [vmem:[%s7036_s5 + $0x158] sm:$0xff]  }
 0x253   :  { %5114 = vmatprep.subr.bf16.mxu1 %v5758_v1 }
 0x256   :  { %5115 = vmatpush3.bf16.msra.mxu1 %v5539_v43  ;;  %v5566_v43 = vld [vmem:[%s7036_s5 + $0x160] sm:$0xff]  }
 0x257   :  { %4716 = vmatprep.subr.bf16.mxu1 %v5546_v0  ;;  %v5584_v0 = vld [vmem:[%s7035_s4 + $0x20] sm:$0xff]  }
 0x2ad   :  { %v992_v44 = vpop.f32.mrb[16].mxu0 }
 0x2ae   :  { %v1226_v45 = vpack.c.bf16 %v992_v44, %v992_v44  ;;  %v5080_v46 = vpop.f32.mrb[17].mxu0  ;;  %v5569_v44 = vld [vmem:[%s7036_s5 + $0x168] sm:$0xff]  }
 0x2af   :  { %v995_v48 = vpop.f32.mrb[18].mxu0  ;;  %v5571_v46 = vld [vmem:[%s7036_s5 + $0x178] sm:$0xff]  }
 0x2b0   :  { %v5081_v49 = vpop.f32.mrb[19].mxu0  ;;  %1410 = vmatprep.mubr.bf16.mxu0 %v1226_v45  ;;  %v5570_v45 = vld [vmem:[%s7036_s5 + $0x170] sm:$0xff]   ;;  %v5573_v48 = vld [vmem:[%s7035_s4 + $0x248] sm:$0xff]  }
 0x2b1   :  { %1411 = vmatmul.mubr.bf16.vlgmr.msra.gmra.mrb[24].mxu0 %v5954_v36  ;;  %v5543_v36 = vld [vmem:[%s7035_s4 + $0x218] sm:$0xff]   ;;  %v5574_v49 = vld [vmem:[%s7035_s4 + $0x250] sm:$0xff]  }
 0x2b2   :  { %5121 = vmatpush3.bf16.msra.mxu0 %v5540_v47  ;;  %5136 = vmatprep.mubr.msk.bf16.mxu0 %vm5759_vm0, %v5758_v1  ;;  %v5572_v47 = vld [vmem:[%s7035_s4 + $0x240] sm:$0xff]  }
 0x2b3   :  { %5122 = vmatprep.subr.bf16.mxu0 %v5758_v1 }
 0x2b6   :  { %5123 = vmatpush3.bf16.msra.mxu0 %v5541_v50  ;;  %v5575_v50 = vld [vmem:[%s7035_s4 + $0x258] sm:$0xff]  }
 0x2b7   :  { %5124 = vmatprep.subr.bf16.mxu0 %v5758_v1 }
 0x2ba   :  { %5125 = vmatpush3.bf16.msra.mxu0 %v5542_v51  ;;  %v5576_v51 = vld [vmem:[%s7035_s4 + $0x260] sm:$0xff]  }
 0x2bb   :  { %5126 = vmatprep.subr.bf16.mxu0 %v5758_v1 }
 0x2be   :  { %5127 = vmatpush3.bf16.msra.mxu0 %v5543_v36  ;;  %v5577_v36 = vld [vmem:[%s7035_s4 + $0x268] sm:$0xff]  }
 0x2bf   :  { %5128 = vmatprep.subr.bf16.mxu0 %v5758_v1 }
 0x2c2   :  { %5129 = vmatpush3.bf16.msra.mxu0 %v5544_v52 }
 0x2c3   :  { %5130 = vmatprep.subr.bf16.mxu0 %v5758_v1 }
 0x2c6   :  { %5131 = vmatpush3.bf16.msra.mxu0 %v5545_v63  ;;  %v5583_v63 = vld [vmem:[%s7035_s4 + $0x18] sm:$0xff]  }
 0x2c7   :  { %5132 = vmatprep.subr.bf16.mxu0 %v5758_v1 }
 0x2ca   :  { %5133 = vmatpush3.bf16.msra.mxu0 %v5547_v3  ;;  %v5586_v3 = vld [vmem:[%s7035_s4 + $0x30] sm:$0xff]  }
 0x2cb   :  { %5134 = vmatprep.subr.bf16.mxu0 %v5758_v1 }
 0x2cd   :  { %v1038_v53 = vpop.f32.mrb[16].mxu1 }
 0x2ce   :  { %v1227_v54 = vpack.c.bf16 %v1038_v53, %v1038_v53  ;;  %v5086_v55 = vpop.f32.mrb[17].mxu1  ;;  %5135 = vmatpush3.bf16.msra.mxu0 %v5550_v10  ;;  %v4210_v10 = vld [vmem:[%s7037_s6 + $0xa] ss:$0 sm:$0xff] }
 0x2cf   :  { %v1041_v56 = vpop.f32.mrb[18].mxu1  ;;  %5140 = vmatprep.subr.bf16.mxu0 %v5758_v1 }
 0x2d0   :  { %v5087_v57 = vpop.f32.mrb[19].mxu1  ;;  %5117 = vmatmul.mubr.bf16.vlgmr.msra.gmra.mrb[24].mxu1 %v1227_v54 }
 0x2d1   :  { %4717 = vmatpush3.bf16.msra.mxu1 %v5548_v2  ;;  %v5585_v2 = vld [vmem:[%s7035_s4 + $0x28] sm:$0xff]  }
 0x2d2   :  { %4718 = vmatprep.subr.bf16.mxu1 %v5549_v9 }
 0x2d5   :  { %4719 = vmatpush3.bf16.msra.mxu1 %v5551_v11 }
 0x2d6   :  { %4720 = vmatprep.subr.bf16.mxu1 %v5552_v13 }
 0x2d9   :  { %4721 = vmatpush3.bf16.msra.mxu1 %v5553_v14 }
 0x2da   :  { %4722 = vmatprep.subr.bf16.mxu1 %v5555_v15 }
 0x2dd   :  { %4723 = vmatpush3.bf16.msra.mxu1 %v5556_v16 }
 0x2de   :  { %4724 = vmatprep.subr.bf16.mxu1 %v5558_v17 }
 0x2e1   :  { %4725 = vmatpush3.bf16.msra.mxu1 %v5559_v18 }
 0x2e2   :  { %4726 = vmatprep.subr.bf16.mxu1 %v5561_v19 }
 0x2e5   :  { %4727 = vmatpush3.bf16.msra.mxu1 %v5562_v20 }
 0x2e6   :  { %4728 = vmatprep.subr.bf16.mxu1 %v5564_v21 }
 0x2e9   :  { %4729 = vmatpush3.bf16.msra.mxu1 %v5565_v22 }
 0x2ea   :  { %4730 = vmatprep.subr.bf16.mxu1 %v5567_v23  ;;  %v5587_v23 = vld [vmem:[%s7035_s4 + $0x38] sm:$0xff]  }
 0x2ec   :  { %v1094_v58 = vpop.f32.mrb[20].mxu0 }
 0x2ed   :  { %v5092_v59 = vpop.f32.mrb[21].mxu0  ;;  %4731 = vmatpush3.bf16.msra.mxu1 %v5568_v24  ;;  %v5612_v24 = vld [vmem:[%s7035_s4 + $0x40] sm:$0xff]  }
 0x2ee   :  { %v1097_v60 = vpop.f32.mrb[22].mxu0  ;;  %5160 = vmatprep.subr.bf16.mxu1 %v5758_v1  ;;  %v5579_v59 = vld [vmem:[%s7035_s4 + $0x278] sm:$0xff]  }
 0x2ef   :  { %v1624_v61 = vpack.c.bf16 %v1097_v60, %v1094_v58  ;;  %v5093_v62 = vpop.f32.mrb[23].mxu0  ;;  %v5578_v58 = vld [vmem:[%s7035_s4 + $0x270] sm:$0xff]   ;;  %v5580_v60 = vld [vmem:[%s7035_s4] sm:$0xff]  }
 0x2f0   :  { %v5582_v62 = vld [vmem:[%s7035_s4 + $0x10] sm:$0xff]  }
 0x2f1   :  { %1808 = vmatprep.mubr.bf16.mxu1 %v1624_v61  ;;  %v5581_v61 = vld [vmem:[%s7035_s4 + $0x8] sm:$0xff]  }
 0x2f2   :  { %1809 = vmatmul.mubr.bf16.vlgmr.msra.gmra.mrb[28].mxu1 %v5855_v12  ;;  %v5554_v12 = vld [vmem:[%s7036_s5 + $0x140] sm:$0xff]  }
 0x2f3   :  { %5176 = vmatprep.mubr.msk.bf16.mxu1 %vm5759_vm0, %v5758_v1  ;;  %5161 = vmatpush3.bf16.msra.mxu1 %v5572_v47  ;;  %v5597_v47 = vld [vmem:[%s7035_s4 + $0x108] sm:$0xff]  }
 0x2f4   :  { %5162 = vmatprep.subr.bf16.mxu1 %v5758_v1 }
 0x2f7   :  { %5163 = vmatpush3.bf16.msra.mxu1 %v5573_v48  ;;  %v5598_v48 = vld [vmem:[%s7035_s4 + $0x110] sm:$0xff]  }
 0x2f8   :  { %5164 = vmatprep.subr.bf16.mxu1 %v5758_v1 }
 0x2fb   :  { %5165 = vmatpush3.bf16.msra.mxu1 %v5574_v49  ;;  %v5599_v49 = vld [vmem:[%s7035_s4 + $0x118] sm:$0xff]  }
 0x2fc   :  { %5166 = vmatprep.subr.bf16.mxu1 %v5758_v1 }
 0x2ff   :  { %5167 = vmatpush3.bf16.msra.mxu1 %v5575_v50  ;;  %v5600_v50 = vld [vmem:[%s7035_s4 + $0x120] sm:$0xff]  }
 0x300   :  { %5168 = vmatprep.subr.bf16.mxu1 %v5758_v1 }
 0x303   :  { %5169 = vmatpush3.bf16.msra.mxu1 %v5576_v51  ;;  %v5601_v51 = vld [vmem:[%s7035_s4 + $0x128] sm:$0xff]  }
 0x304   :  { %5170 = vmatprep.subr.bf16.mxu1 %v5758_v1 }
 0x307   :  { %5171 = vmatpush3.bf16.msra.mxu1 %v5577_v36  ;;  %v5602_v36 = vld [vmem:[%s7035_s4 + $0x130] sm:$0xff]  }
 0x308   :  { %5172 = vmatprep.subr.bf16.mxu1 %v5758_v1 }
 0x30b   :  { %5173 = vmatpush3.bf16.msra.mxu1 %v5578_v58  ;;  %v5608_v58 = vld [vmem:[%s7035_s4 + $0x1a0] sm:$0xff]  }
 0x30c   :  { %v6271_v4 = vpop.f32.mrb[20].mxu1  ;;  %5174 = vmatprep.subr.bf16.mxu1 %v5758_v1 }
 0x30d   :  { %v5098_v5 = vpop.f32.mrb[21].mxu1 }
 0x30e   :  { %v6273_v6 = vpop.f32.mrb[22].mxu1 }
 0x30f   :  { %v1625_v7 = vpack.c.bf16 %v6273_v6, %v6271_v4  ;;  %v5099_v8 = vpop.f32.mrb[23].mxu1  ;;  %5175 = vmatpush3.bf16.msra.mxu1 %v5579_v59  ;;  %v4135_v4 = vld [vmem:[%s7037_s6 + $0x9] ss:$0 sm:$0xff] }
 0x310   :  { %5200 = vmatprep.subr.bf16.mxu1 %v5758_v1  ;;  %v5609_v59 = vld [vmem:[%s7035_s4 + $0x1a8] sm:$0xff]  }
 0x384   :  { %v4692_v25 = vpop.f32.mrb[24].mxu0 }
 0x385   :  { %v4693_v26 = vpop.f32.mrb[25].mxu0 }
 0x386   :  { %v4694_v27 = vadd.f32 %v4693_v26, %v4692_v25  ;;  %v4695_v28 = vpop.f32.mrb[26].mxu0  ;;  %v5613_v25 = vld [vmem:[%s7035_s4 + $0x48] sm:$0xff]   ;;  %v5614_v26 = vld [vmem:[%s7035_s4 + $0x50] sm:$0xff]  }
 0x387   :  { %v4696_v29 = vpop.f32.mrb[27].mxu0  ;;  %v5616_v28 = vld [vmem:[%s7035_s4 + $0x60] sm:$0xff]  }
 0x388   :  { %v1413_v31 = vadd.f32 %v4694_v27, %v4110_v30  ;;  %v5615_v27 = vld [vmem:[%s7035_s4 + $0x58] sm:$0xff]   ;;  %v5617_v29 = vld [vmem:[%s7035_s4 + $0x68] sm:$0xff]  }
 0x389   :  { %v4235_v30 = vld [vmem:[%s7037_s6 + $0xb] ss:$0 sm:$0xff] }
 0x3a3   :  { %v1452_v32 = vpop.f32.mrb[24].mxu1 }
 0x3a4   :  { %v1453_v33 = vadd.f32 %v1452_v32, %v1413_v31  ;;  %v5118_v34 = vpop.f32.mrb[25].mxu1 }
 0x3a5   :  { %v1455_v35 = vpop.f32.mrb[26].mxu1 }
 0x3a6   :  { %v1458_v37 = vmax.f32 %v1453_v33, 0.0  ;;  %v5119_v38 = vpop.f32.mrb[27].mxu1 }
 0x3a7   :  { %v5588_v38 = vld [vmem:[%s7035_s4 + $0x80] sm:$0xff]  }
 0x3a8   :  { %v1459_v39 = vpack.c.bf16 %v1458_v37, %v1458_v37 }
 0x3aa   :  { %5137 = vmatmul.mubr.bf16.vlgmr.msra.gmra.mrb[28].mxu0 %v1459_v39  ;;  %v5589_v39 = vld [vmem:[%s7035_s4 + $0x88] sm:$0xff]  }
 0x3ab   :  { %5141 = vmatpush3.bf16.msra.mxu0 %v5554_v12  ;;  %5156 = vmatprep.mubr.msk.bf16.mxu0 %vm5759_vm0, %v5758_v1 }
 0x3ac   :  { %5142 = vmatprep.subr.bf16.mxu0 %v5758_v1 }
 0x3af   :  { %5143 = vmatpush3.bf16.msra.mxu0 %v5557_v40  ;;  %v5590_v40 = vld [vmem:[%s7035_s4 + $0x90] sm:$0xff]  }
 0x3b0   :  { %5144 = vmatprep.subr.bf16.mxu0 %v5758_v1 }
 0x3b3   :  { %5145 = vmatpush3.bf16.msra.mxu0 %v5560_v41  ;;  %v5591_v41 = vld [vmem:[%s7035_s4 + $0x98] sm:$0xff]  }
 0x3b4   :  { %5146 = vmatprep.subr.bf16.mxu0 %v5758_v1 }
 0x3b7   :  { %5147 = vmatpush3.bf16.msra.mxu0 %v5563_v42  ;;  %v5592_v42 = vld [vmem:[%s7035_s4 + $0xa0] sm:$0xff]  }
 0x3b8   :  { %5148 = vmatprep.subr.bf16.mxu0 %v5758_v1 }
 0x3bb   :  { %5149 = vmatpush3.bf16.msra.mxu0 %v5566_v43  ;;  %v5593_v43 = vld [vmem:[%s7035_s4 + $0xa8] sm:$0xff]  }
 0x3bc   :  { %5150 = vmatprep.subr.bf16.mxu0 %v5758_v1 }
 0x3bf   :  { %5151 = vmatpush3.bf16.msra.mxu0 %v5569_v44  ;;  %v5594_v44 = vld [vmem:[%s7035_s4 + $0xb0] sm:$0xff]  }
 0x3c0   :  { %5152 = vmatprep.subr.bf16.mxu0 %v5758_v1 }
 0x3c3   :  { %5153 = vmatpush3.bf16.msra.mxu0 %v5570_v45  ;;  %v5595_v45 = vld [vmem:[%s7035_s4 + $0xb8] sm:$0xff]  }
 0x3c4   :  { %5154 = vmatprep.subr.bf16.mxu0 %v5758_v1 }
 0x3c5   :  { %v4732_v52 = vpop.f32.mrb[28].mxu1 }
 0x3c6   :  { %v4733_v53 = vpop.f32.mrb[29].mxu1 }
 0x3c7   :  { %5155 = vmatpush3.bf16.msra.mxu0 %v5571_v46  ;;  %v4734_v54 = vadd.f32 %v4733_v53, %v4732_v52  ;;  %v4735_v55 = vpop.f32.mrb[30].mxu1  ;;  %v5596_v46 = vld [vmem:[%s7035_s4 + $0x100] sm:$0xff]   ;;  %v5603_v52 = vld [vmem:[%s7035_s4 + $0x138] sm:$0xff]  }
 0x3c8   :  { %5180 = vmatprep.subr.bf16.mxu0 %v5758_v1  ;;  %v4736_v56 = vpop.f32.mrb[31].mxu1  ;;  %v5604_v53 = vld [vmem:[%s7035_s4 + $0x180] sm:$0xff]  }
 0x3c9   :  { %v4737_v57 = vadd.f32 %v4736_v56, %v4735_v55  ;;  %v1811_v11 = vadd.f32 %v4734_v54, %v4210_v10  ;;  %v5605_v55 = vld [vmem:[%s7035_s4 + $0x188] sm:$0xff]   ;;  %v5606_v56 = vld [vmem:[%s7035_s4 + $0x190] sm:$0xff]  }
 0x3ca   :  { %5157 = vmatmul.mubr.bf16.vlgmr.msra.gmra.mrb[32].mxu0 %v1625_v7 }
 0x3cb   :  { %5196 = vmatprep.mubr.msk.bf16.mxu0 %vm5759_vm0, %v5758_v1  ;;  %5181 = vmatpush3.bf16.msra.mxu0 %v5580_v60  ;;  %v1814_v16 = vadd.f32 %v4737_v57, %v4210_v10  ;;  %v5607_v57 = vld [vmem:[%s7035_s4 + $0x198] sm:$0xff]   ;;  %v5618_v60 = vld [vmem:[%s7035_s4 + $0x70] sm:$0xff]   ;;  %v5620_v10 = vld [vmem:[%s7035_s4 + $0xc0] sm:$0xff]  }
 0x3cc   :  { %5182 = vmatprep.subr.bf16.mxu0 %v5758_v1 }
 0x3cf   :  { %5183 = vmatpush3.bf16.msra.mxu0 %v5581_v61  ;;  %v5610_v61 = vld [vmem:[%s7035_s4 + $0x1b0] sm:$0xff]  }
 0x3d0   :  { %5184 = vmatprep.subr.bf16.mxu0 %v5758_v1 }
 0x3d3   :  { %5185 = vmatpush3.bf16.msra.mxu0 %v5582_v62  ;;  %v5619_v62 = vld [vmem:[%s7035_s4 + $0x78] sm:$0xff]  }
 0x3d4   :  { %5186 = vmatprep.subr.bf16.mxu0 %v5758_v1 }
 0x3d7   :  { %5187 = vmatpush3.bf16.msra.mxu0 %v5583_v63  ;;  %v5611_v63 = vld [vmem:[%s7035_s4 + $0x1b8] sm:$0xff]  }
 0x3d8   :  { %5188 = vmatprep.subr.bf16.mxu0 %v5758_v1 }
 0x3db   :  { %5189 = vmatpush3.bf16.msra.mxu0 %v5584_v0  ;;  %v4261_v0 = vld [vmem:[%s7037_s6] ss:$0 sm:$0xff] }
 0x3dc   :  { %5190 = vmatprep.subr.bf16.mxu0 %v5758_v1 }
 0x3df   :  { %5191 = vmatpush3.bf16.msra.mxu0 %v5585_v2 }
 0x3e0   :  { %5192 = vmatprep.subr.bf16.mxu0 %v5758_v1 }
 0x3e3   :  { %5193 = vmatpush3.bf16.msra.mxu0 %v5586_v3 }
 0x3e4   :  { %5194 = vmatprep.subr.bf16.mxu0 %v5758_v1 }
 0x3e7   :  { %5195 = vmatpush3.bf16.msra.mxu0 %v5587_v23 }
 0x3e8   :  { %5220 = vmatprep.subr.bf16.mxu0 %v5758_v1 }
 0x47d   :  { %v1548_v5 = vpop.f32.mrb[28].mxu0 }
 0x47e   :  { %v6433_v6 = vadd.f32 %v4135_v4, %v1548_v5  ;;  %v5138_v7 = vpop.f32.mrb[29].mxu0 }
 0x47f   :  { %v1551_v8 = vpop.f32.mrb[30].mxu0 }
 0x480   :  { %1958 = vst [vmem:[#allocation4] sm:$0xff] %v6433_v6  ;;  %v5139_v9 = vpop.f32.mrb[31].mxu0  ;;  %v6548_v54 = vpack.c.bf16 %v6433_v6, %v6433_v6 }
 0x49d   :  { %v1851_v13 = vpop.f32.mrb[32].mxu0 }
 0x49e   :  { %v1852_v14 = vadd.f32 %v1851_v13, %v1811_v11  ;;  %v5158_v15 = vpop.f32.mrb[33].mxu0  ;;  %v5621_v13 = vld [vmem:[%s7035_s4 + $0xc8] sm:$0xff]  }
 0x49f   :  { %v1854_v17 = vpop.f32.mrb[34].mxu0  ;;  %v5623_v15 = vld [vmem:[%s7035_s4 + $0xd8] sm:$0xff]  }
 0x4a0   :  { %v1855_v18 = vadd.f32 %v1854_v17, %v1814_v16  ;;  %v5159_v19 = vpop.f32.mrb[35].mxu0  ;;  %v1858_v20 = vmax.f32 %v1852_v14, 0.0  ;;  %v5622_v14 = vld [vmem:[%s7035_s4 + $0xd0] sm:$0xff]   ;;  %v5624_v16 = vld [vmem:[%s7035_s4 + $0xe0] sm:$0xff]   ;;  %v5625_v17 = vld [vmem:[%s7035_s4 + $0xe8] sm:$0xff]  }
 0x4a1   :  { %v5626_v19 = vld [vmem:[%s7035_s4 + $0xf0] sm:$0xff]  }
 0x4a2   :  { %v1859_v21 = vmax.f32 %v1855_v18, 0.0  ;;  %v4313_v18 = vld [vmem:[%s7037_s6 + $0x2] ss:$0 sm:$0xff] }
 0x4a4   :  { %v1860_v22 = vpack.c.bf16 %v1859_v21, %v1858_v20 }
 0x4a6   :  { %5177 = vmatmul.mubr.bf16.vlgmr.msra.gmra.mrb[32].mxu1 %v1860_v22 }
 0x4a7   :  { %5216 = vmatprep.mubr.msk.bf16.mxu1 %vm5759_vm0, %v5758_v1  ;;  %5201 = vmatpush3.bf16.msra.mxu1 %v5612_v24  ;;  %v5627_v24 = vld [vmem:[%s7035_s4 + $0xf8] sm:$0xff]  }
 0x4a8   :  { %5202 = vmatprep.subr.bf16.mxu1 %v5758_v1 }
 0x4ab   :  { %5203 = vmatpush3.bf16.msra.mxu1 %v5613_v25 }
 0x4ac   :  { %5204 = vmatprep.subr.bf16.mxu1 %v5758_v1 }
 0x4af   :  { %5205 = vmatpush3.bf16.msra.mxu1 %v5614_v26 }
 0x4b0   :  { %5206 = vmatprep.subr.bf16.mxu1 %v5758_v1 }
 0x4b3   :  { %5207 = vmatpush3.bf16.msra.mxu1 %v5615_v27 }
 0x4b4   :  { %5208 = vmatprep.subr.bf16.mxu1 %v5758_v1 }
 0x4b7   :  { %5209 = vmatpush3.bf16.msra.mxu1 %v5616_v28 }
 0x4b8   :  { %5210 = vmatprep.subr.bf16.mxu1 %v5758_v1 }
 0x4bb   :  { %5211 = vmatpush3.bf16.msra.mxu1 %v5617_v29  ;;  %v5628_v29 = vld [vmem:[%s7035_s4 + $0x140] sm:$0xff]  }
 0x4bc   :  { %5212 = vmatprep.subr.bf16.mxu1 %v5758_v1 }
 0x4bf   :  { %5213 = vmatpush3.bf16.msra.mxu1 %v5618_v60 }
 0x4c0   :  { %5214 = vmatprep.subr.bf16.mxu1 %v5758_v1 }
 0x4c3   :  { %5215 = vmatpush3.bf16.msra.mxu1 %v5619_v62 }
 0x4c4   :  { %5240 = vmatprep.subr.bf16.mxu1 %v5758_v1 }
 0x579   :  { %v1949_v31 = vpop.f32.mrb[32].mxu1 }
 0x57a   :  { %v1950_v32 = vadd.f32 %v4235_v30, %v1949_v31  ;;  %v5178_v33 = vpop.f32.mrb[33].mxu1  ;;  %v5629_v31 = vld [vmem:[%s7035_s4 + $0x148] sm:$0xff]  }
 0x57b   :  { %v1952_v34 = vpop.f32.mrb[34].mxu1  ;;  %v5631_v33 = vld [vmem:[%s7035_s4 + $0x158] sm:$0xff]  }
 0x57c   :  { %1956 = vst [vmem:[#allocation2] sm:$0xff] %v1950_v32  ;;  %v1953_v35 = vadd.f32 %v4235_v30, %v1952_v34  ;;  %v5179_v37 = vpop.f32.mrb[35].mxu1  ;;  %v5632_v34 = vld [vmem:[%s7035_s4 + $0x160] sm:$0xff]  }
 0x57d   :  { %v4365_v37 = vld [vmem:[%s7037_s6 + $0x4] ss:$0 sm:$0xff] }
 0x57e   :  { %1957 = vst [vmem:[#allocation2 + $0x8] sm:$0xff] %v1953_v35  ;;  %v6475_v12 = vpack.c.bf16 %v1953_v35, %v1950_v32  ;;  %v5630_v32 = vld [vmem:[%s7035_s4 + $0x150] sm:$0xff]   ;;  %v5633_v35 = vld [vmem:[%s7035_s4 + $0x168] sm:$0xff]  }
 0x580   :  { %5197 = vmatmul.mubr.bf16.vlgmr.msra.gmra.mrb[36].mxu0 %v6475_v12 }
 0x581   :  { %5221 = vmatpush3.bf16.msra.mxu0 %v5588_v38  ;;  %5236 = vmatprep.mubr.msk.bf16.mxu0 %vm5759_vm0, %v5758_v1  ;;  %v5634_v38 = vld [vmem:[%s7035_s4 + $0x170] sm:$0xff]  }
 0x582   :  { %5222 = vmatprep.subr.bf16.mxu0 %v5758_v1 }
 0x585   :  { %5223 = vmatpush3.bf16.msra.mxu0 %v5589_v39 }
 0x586   :  { %5224 = vmatprep.subr.bf16.mxu0 %v5758_v1 }
 0x589   :  { %5225 = vmatpush3.bf16.msra.mxu0 %v5590_v40 }
 0x58a   :  { %5226 = vmatprep.subr.bf16.mxu0 %v5758_v1 }
 0x58d   :  { %5227 = vmatpush3.bf16.msra.mxu0 %v5591_v41 }
 0x58e   :  { %5228 = vmatprep.subr.bf16.mxu0 %v5758_v1 }
 0x591   :  { %5229 = vmatpush3.bf16.msra.mxu0 %v5592_v42 }
 0x592   :  { %5230 = vmatprep.subr.bf16.mxu0 %v5758_v1 }
 0x595   :  { %5231 = vmatpush3.bf16.msra.mxu0 %v5593_v43  ;;  %v5635_v43 = vld [vmem:[%s7035_s4 + $0x178] sm:$0xff]  }
 0x596   :  { %5232 = vmatprep.subr.bf16.mxu0 %v5758_v1 }
 0x599   :  { %5233 = vmatpush3.bf16.msra.mxu0 %v5594_v44 }
 0x59a   :  { %5234 = vmatprep.subr.bf16.mxu0 %v5758_v1 }
 0x59d   :  { %5235 = vmatpush3.bf16.msra.mxu0 %v5595_v45 }
 0x59e   :  { %5260 = vmatprep.subr.bf16.mxu0 %v5758_v1 }
 0x5a0   :  { %5237 = vmatmul.mubr.bf16.vlgmr.msra.gmra.mrb[40].mxu0 %v6475_v12 }
 0x5a1   :  { %5261 = vmatpush3.bf16.msra.mxu0 %v5596_v46  ;;  %5276 = vmatprep.mubr.msk.bf16.mxu0 %vm5759_vm0, %v5758_v1  ;;  %v5636_v46 = vld [vmem:[%s7035_s4 + $0x1c0] sm:$0xff]  }
 0x5a2   :  { %5262 = vmatprep.subr.bf16.mxu0 %v5758_v1 }
 0x5a5   :  { %5263 = vmatpush3.bf16.msra.mxu0 %v5597_v47 }
 0x5a6   :  { %5264 = vmatprep.subr.bf16.mxu0 %v5758_v1 }
 0x5a9   :  { %5265 = vmatpush3.bf16.msra.mxu0 %v5598_v48  ;;  %v5637_v48 = vld [vmem:[%s7035_s4 + $0x1c8] sm:$0xff]  }
 0x5aa   :  { %5266 = vmatprep.subr.bf16.mxu0 %v5758_v1 }
 0x5ad   :  { %5267 = vmatpush3.bf16.msra.mxu0 %v5599_v49  ;;  %v5638_v49 = vld [vmem:[%s7035_s4 + $0x1d0] sm:$0xff]  }
 0x5ae   :  { %5268 = vmatprep.subr.bf16.mxu0 %v5758_v1 }
 0x5b1   :  { %5269 = vmatpush3.bf16.msra.mxu0 %v5600_v50  ;;  %v5639_v50 = vld [vmem:[%s7035_s4 + $0x1d8] sm:$0xff]  }
 0x5b2   :  { %5270 = vmatprep.subr.bf16.mxu0 %v5758_v1 }
 0x5b5   :  { %5271 = vmatpush3.bf16.msra.mxu0 %v5601_v51  ;;  %v5640_v51 = vld [vmem:[%s7035_s4 + $0x1e0] sm:$0xff]  }
 0x5b6   :  { %5272 = vmatprep.subr.bf16.mxu0 %v5758_v1 }
 0x5b9   :  { %5273 = vmatpush3.bf16.msra.mxu0 %v5602_v36  ;;  %v5641_v36 = vld [vmem:[%s7035_s4 + $0x1e8] sm:$0xff]  }
 0x5ba   :  { %5274 = vmatprep.subr.bf16.mxu0 %v5758_v1 }
 0x5bd   :  { %5275 = vmatpush3.bf16.msra.mxu0 %v5603_v52  ;;  %v4417_v52 = vld [vmem:[%s7037_s6 + $0x6] ss:$0 sm:$0xff] }
 0x5be   :  { %5300 = vmatprep.subr.bf16.mxu0 %v5758_v1 }
 0x5c0   :  { %5277 = vmatmul.mubr.bf16.vlgmr.msra.gmra.mrb[44].mxu0 %v6548_v54 }
 0x5c1   :  { %5301 = vmatpush3.bf16.msra.mxu0 %v5604_v53  ;;  %5316 = vmatprep.mubr.msk.bf16.mxu0 %vm5759_vm0, %v5758_v1  ;;  %v5642_v53 = vld [vmem:[%s7035_s4 + $0x1f0] sm:$0xff]  }
 0x5c2   :  { %5302 = vmatprep.subr.bf16.mxu0 %v5758_v1 }
 0x5c5   :  { %5303 = vmatpush3.bf16.msra.mxu0 %v5605_v55 }
 0x5c6   :  { %5304 = vmatprep.subr.bf16.mxu0 %v5758_v1 }
 0x5c9   :  { %5305 = vmatpush3.bf16.msra.mxu0 %v5606_v56 }
 0x5ca   :  { %5306 = vmatprep.subr.bf16.mxu0 %v5758_v1 }
 0x5cd   :  { %5307 = vmatpush3.bf16.msra.mxu0 %v5607_v57 }
 0x5ce   :  { %5308 = vmatprep.subr.bf16.mxu0 %v5758_v1 }
 0x5d1   :  { %5309 = vmatpush3.bf16.msra.mxu0 %v5608_v58 }
 0x5d2   :  { %5310 = vmatprep.subr.bf16.mxu0 %v5758_v1 }
 0x5d5   :  { %5311 = vmatpush3.bf16.msra.mxu0 %v5609_v59  ;;  %v5643_v59 = vld [vmem:[%s7035_s4 + $0x1f8] sm:$0xff]  }
 0x5d6   :  { %5312 = vmatprep.subr.bf16.mxu0 %v5758_v1 }
 0x5d9   :  { %5313 = vmatpush3.bf16.msra.mxu0 %v5610_v61 }
 0x5da   :  { %5314 = vmatprep.subr.bf16.mxu0 %v5758_v1 }
 0x5dd   :  { %5315 = vmatpush3.bf16.msra.mxu0 %v5611_v63  ;;  %v4270_v63 = vld [vmem:[%s7037_s6 + $0x1] ss:$0 sm:$0xff] }
 0x5de   :  { %5340 = vmatprep.subr.bf16.mxu0 %v5758_v1 }
 0x5e0   :  { %5317 = vmatmul.mubr.bf16.vlgmr.msra.gmra.mrb[48].mxu0 %v6548_v54 }
 0x5e1   :  { %5342 = vmatprep.mubr.msk.bf16.mxu0 %vm5759_vm0, %v5758_v1 }
 0x653   :  { %v2082_v2 = vpop.f32.mrb[36].mxu0 }
 0x654   :  { %v2083_v3 = vadd.f32 %v4261_v0, %v2082_v2  ;;  %v5198_v4 = vpop.f32.mrb[37].mxu0 }
 0x655   :  { %v2085_v5 = vpop.f32.mrb[38].mxu0 }
 0x656   :  { %v2086_v6 = vadd.f32 %v4261_v0, %v2085_v5  ;;  %v5199_v7 = vpop.f32.mrb[39].mxu0  ;;  %v2089_v8 = vmax.f32 %v2083_v3, 0.0 }
 0x658   :  { %v2090_v9 = vmax.f32 %v2086_v6, 0.0 }
 0x65a   :  { %v2091_v11 = vpack.c.bf16 %v2090_v9, %v2089_v8  ;;  %v2863_v8 = vld [vmem:[%s7033_s2] sm:$0xf] }
 0x65b   :  { %v4322_v9 = vld [vmem:[%s7037_s6 + $0x3] ss:$0 sm:$0xff] }
 0x65c   :  { %5217 = vmatmul.mubr.bf16.vlgmr.msra.gmra.mrb[36].mxu1 %v2091_v11 }
 0x65d   :  { %5241 = vmatpush3.bf16.msra.mxu1 %v5620_v10  ;;  %5256 = vmatprep.mubr.msk.bf16.mxu1 %vm5759_vm0, %v5758_v1 }
 0x65e   :  { %5242 = vmatprep.subr.bf16.mxu1 %v5758_v1 }
 0x661   :  { %5243 = vmatpush3.bf16.msra.mxu1 %v5621_v13 }
 0x662   :  { %5244 = vmatprep.subr.bf16.mxu1 %v5758_v1 }
 0x665   :  { %5245 = vmatpush3.bf16.msra.mxu1 %v5622_v14 }
 0x666   :  { %5246 = vmatprep.subr.bf16.mxu1 %v5758_v1 }
 0x669   :  { %5247 = vmatpush3.bf16.msra.mxu1 %v5623_v15 }
 0x66a   :  { %5248 = vmatprep.subr.bf16.mxu1 %v5758_v1 }
 0x66d   :  { %5249 = vmatpush3.bf16.msra.mxu1 %v5624_v16 }
 0x66e   :  { %5250 = vmatprep.subr.bf16.mxu1 %v5758_v1 }
 0x671   :  { %5251 = vmatpush3.bf16.msra.mxu1 %v5625_v17 }
 0x672   :  { %5252 = vmatprep.subr.bf16.mxu1 %v5758_v1 }
 0x673   :  { %v2309_v20 = vpop.f32.mrb[40].mxu0 }
 0x674   :  { %v2310_v21 = vadd.f32 %v4313_v18, %v2309_v20  ;;  %v5238_v22 = vpop.f32.mrb[41].mxu0 }
 0x675   :  { %v2312_v23 = vpop.f32.mrb[42].mxu0  ;;  %5253 = vmatpush3.bf16.msra.mxu1 %v5626_v19  ;;  %v4374_v19 = vld [vmem:[%s7037_s6 + $0x5] ss:$0 sm:$0xff] }
 0x676   :  { %v2313_v25 = vadd.f32 %v4313_v18, %v2312_v23  ;;  %v5239_v26 = vpop.f32.mrb[43].mxu0  ;;  %5254 = vmatprep.subr.bf16.mxu1 %v5758_v1  ;;  %v2316_v27 = vmax.f32 %v2310_v21, 0.0  ;;  %v4436_v18 = vld [vmem:[%s7033_s2 + $0x4] sm:$0xf] }
 0x677   :  { %v5645_v26 = vld [vmem:[%s7036_s5 + $0x40] sm:$0xff]  }
 0x678   :  { %v2317_v28 = vmax.f32 %v2313_v25, 0.0 }
 0x679   :  { %5255 = vmatpush3.bf16.msra.mxu1 %v5627_v24 }
 0x67a   :  { %v2318_v30 = vpack.c.bf16 %v2317_v28, %v2316_v27  ;;  %5280 = vmatprep.subr.bf16.mxu1 %v5758_v1  ;;  %v5644_v28 = vld [vmem:[%s7034_s3] sm:$0xff]  }
 0x67c   :  { %5257 = vmatmul.mubr.bf16.vlgmr.msra.gmra.mrb[40].mxu1 %v2318_v30  ;;  %v5647_v30 = vld [vmem:[%s7036_s5 + $0x48] sm:$0xff]  }
 0x67d   :  { %5281 = vmatpush3.bf16.msra.mxu1 %v5628_v29  ;;  %5296 = vmatprep.mubr.msk.bf16.mxu1 %vm5759_vm0, %v5758_v1  ;;  %v5646_v29 = vld [vmem:[%s7036_s5] sm:$0xff]  }
 0x67e   :  { %5282 = vmatprep.subr.bf16.mxu1 %v5758_v1 }
 0x681   :  { %5283 = vmatpush3.bf16.msra.mxu1 %v5629_v31  ;;  %v5648_v31 = vld [vmem:[%s7036_s5 + $0x8] sm:$0xff]  }
 0x682   :  { %5284 = vmatprep.subr.bf16.mxu1 %v5758_v1 }
 0x685   :  { %5285 = vmatpush3.bf16.msra.mxu1 %v5630_v32  ;;  %v5649_v32 = vld [vmem:[%s7036_s5 + $0x50] sm:$0xff]  }
 0x686   :  { %5286 = vmatprep.subr.bf16.mxu1 %v5758_v1 }
 0x689   :  { %5287 = vmatpush3.bf16.msra.mxu1 %v5631_v33  ;;  %v5650_v33 = vld [vmem:[%s7036_s5 + $0x10] sm:$0xff]  }
 0x68a   :  { %5288 = vmatprep.subr.bf16.mxu1 %v5758_v1 }
 0x68d   :  { %5289 = vmatpush3.bf16.msra.mxu1 %v5632_v34  ;;  %v5651_v34 = vld [vmem:[%s7036_s5 + $0x58] sm:$0xff]  }
 0x68e   :  { %5290 = vmatprep.subr.bf16.mxu1 %v5758_v1 }
 0x691   :  { %5291 = vmatpush3.bf16.msra.mxu1 %v5633_v35  ;;  %v5652_v35 = vld [vmem:[%s7036_s5 + $0x18] sm:$0xff]  }
 0x692   :  { %5292 = vmatprep.subr.bf16.mxu1 %v5758_v1 }
 0x693   :  { %v2537_v39 = vpop.f32.mrb[44].mxu0 }
 0x694   :  { %v2538_v40 = vadd.f32 %v4365_v37, %v2537_v39  ;;  %v5278_v41 = vpop.f32.mrb[45].mxu0  ;;  %v5653_v37 = vld [vmem:[%s7036_s5 + $0x60] sm:$0xff]   ;;  %v5655_v39 = vld [vmem:[%s7036_s5 + $0x68] sm:$0xff]  }
 0x695   :  { %v2540_v42 = vpop.f32.mrb[46].mxu0  ;;  %5293 = vmatpush3.bf16.msra.mxu1 %v5634_v38  ;;  %v5654_v38 = vld [vmem:[%s7036_s5 + $0x20] sm:$0xff]   ;;  %v5657_v41 = vld [vmem:[%s7036_s5 + $0x70] sm:$0xff]  }
 0x696   :  { %v2543_v44 = vmax.f32 %v2538_v40, 0.0  ;;  %v5279_v45 = vpop.f32.mrb[47].mxu0  ;;  %5294 = vmatprep.subr.bf16.mxu1 %v5758_v1  ;;  %v5656_v40 = vld [vmem:[%s7036_s5 + $0x28] sm:$0xff]   ;;  %v4426_v42 = vld [vmem:[%s7037_s6 + $0x7] ss:$0 sm:$0xff] }
 0x698   :  { %v2544_v47 = vpack.c.bf16 %v2543_v44, %v2543_v44  ;;  %v5659_v44 = vld [vmem:[%s7036_s5 + $0x78] sm:$0xff]  }
 0x699   :  { %5295 = vmatpush3.bf16.msra.mxu1 %v5635_v43  ;;  %v5658_v43 = vld [vmem:[%s7036_s5 + $0x30] sm:$0xff]  }
 0x69a   :  { %5320 = vmatprep.subr.bf16.mxu1 %v5758_v1 }
 0x69c   :  { %5297 = vmatmul.mubr.bf16.vlgmr.msra.gmra.mrb[44].mxu1 %v2544_v47 }
 0x69d   :  { %5321 = vmatpush3.bf16.msra.mxu1 %v5636_v46  ;;  %5336 = vmatprep.mubr.msk.bf16.mxu1 %vm5759_vm0, %v5758_v1 }
 0x69e   :  { %5322 = vmatprep.subr.bf16.mxu1 %v5758_v1 }
 0x6a1   :  { %5323 = vmatpush3.bf16.msra.mxu1 %v5637_v48 }
 0x6a2   :  { %5324 = vmatprep.subr.bf16.mxu1 %v5758_v1 }
 0x6a5   :  { %5325 = vmatpush3.bf16.msra.mxu1 %v5638_v49  ;;  %v5660_v49 = vld [vmem:[%s7036_s5 + $0x38] sm:$0xff]  }
 0x6a6   :  { %5326 = vmatprep.subr.bf16.mxu1 %v5758_v1 }
 0x6a9   :  { %5327 = vmatpush3.bf16.msra.mxu1 %v5639_v50 }
 0x6aa   :  { %5328 = vmatprep.subr.bf16.mxu1 %v5758_v1 }
 0x6ad   :  { %5329 = vmatpush3.bf16.msra.mxu1 %v5640_v51 }
 0x6ae   :  { %5330 = vmatprep.subr.bf16.mxu1 %v5758_v1 }
 0x6b1   :  { %5331 = vmatpush3.bf16.msra.mxu1 %v5641_v36 }
 0x6b2   :  { %5332 = vmatprep.subr.bf16.mxu1 %v5758_v1 }
 0x6b3   :  { %v2761_v55 = vpop.f32.mrb[48].mxu0 }
 0x6b4   :  { %v2762_v56 = vadd.f32 %v4417_v52, %v2761_v55  ;;  %v5318_v57 = vpop.f32.mrb[49].mxu0  ;;  %v5661_v52 = vld [vmem:[%s7034_s3 + $0x8] sm:$0xff]  }
 0x6b5   :  { %v2764_v58 = vpop.f32.mrb[50].mxu0  ;;  %5333 = vmatpush3.bf16.msra.mxu1 %v5642_v53  ;;  %v5662_v53 = vld [vmem:[%s7036_s5 + $0x80] sm:$0xff]   ;;  %v5663_v55 = vld [vmem:[%s7036_s5 + $0x88] sm:$0xff]   ;;  %v5665_v57 = vld [vmem:[%s7036_s5 + $0x98] sm:$0xff]  }
 0x6b6   :  { %v2767_v60 = vmax.f32 %v2762_v56, 0.0  ;;  %v5319_v61 = vpop.f32.mrb[51].mxu0  ;;  %5334 = vmatprep.subr.bf16.mxu1 %v5758_v1  ;;  %v5664_v56 = vld [vmem:[%s7036_s5 + $0x90] sm:$0xff]   ;;  %v5666_v58 = vld [vmem:[%s7036_s5 + $0xa0] sm:$0xff]  }
 0x6b7   :  { %v5669_v61 = vld [vmem:[%s7036_s5 + $0xb8] sm:$0xff]  }
 0x6b8   :  { %v2768_v62 = vpack.c.bf16 %v2767_v60, %v2767_v60  ;;  %v5668_v60 = vld [vmem:[%s7036_s5 + $0xb0] sm:$0xff]  }
 0x6b9   :  { %5335 = vmatpush3.bf16.msra.mxu1 %v5643_v59  ;;  %v5667_v59 = vld [vmem:[%s7036_s5 + $0xa8] sm:$0xff]  }
 0x6ba   :  { %5346 = vmatprep.subr.bf16.mxu1 %v5758_v1 }
 0x6bc   :  { %5337 = vmatmul.mubr.bf16.vlgmr.msra.gmra.mrb[48].mxu1 %v2768_v62  ;;  %v5670_v62 = vld [vmem:[%s7036_s5 + $0x100] sm:$0xff]  }
 0x6bd   :  { %5348 = vmatprep.mubr.msk.bf16.mxu1 %vm5759_vm0, %v5758_v1 }
 0x72f   :  { %v2180_v0 = vpop.f32.mrb[36].mxu1 }
 0x730   :  { %v5218_v2 = vpop.f32.mrb[37].mxu1  ;;  %v2181_v4 = vadd.f32 %v4270_v63, %v2180_v0 }
 0x731   :  { %v2183_v3 = vpop.f32.mrb[38].mxu1 }
 0x732   :  { %v2184_v5 = vadd.f32 %v4270_v63, %v2183_v3  ;;  %v5219_v6 = vpop.f32.mrb[39].mxu1 }
 0x733   :  { %v5671_v6 = vld [vmem:[%s7036_s5 + $0xc0] sm:$0xff]  }
 0x734   :  { %v2864_v7 = vpack.c.bf16 %v2184_v5, %v2181_v4 }
 0x736   :  { %5341 = vmatpush3.bf16.msra.mxu0 %v2864_v7 }
 0x737   :  { %5352 = vmatprep.subr.bf16.mxu0 %v5758_v1 }
 0x739   :  { %5343 = vmatmul.mubr.msk.bf16.vlgmr.msra.gmra.mrb[52].mxu0 %vm954_vm1, %v2863_v8 }
 0x73a   :  { %5354 = vmatprep.mubr.msk.bf16.mxu0 %vm5759_vm0, %v5758_v1 }
 0x74f   :  { %v2407_v10 = vpop.f32.mrb[40].mxu1 }
 0x750   :  { %v5258_v11 = vpop.f32.mrb[41].mxu1  ;;  %v2408_v14 = vadd.f32 %v4322_v9, %v2407_v10 }
 0x751   :  { %v2410_v13 = vpop.f32.mrb[42].mxu1 }
 0x752   :  { %v2411_v15 = vadd.f32 %v4322_v9, %v2410_v13  ;;  %v5259_v16 = vpop.f32.mrb[43].mxu1  ;;  %v5672_v9 = vld [vmem:[%s7036_s5 + $0x108] sm:$0xff]   ;;  %v5674_v13 = vld [vmem:[%s7036_s5 + $0x110] sm:$0xff]  }
 0x753   :  { %v5677_v16 = vld [vmem:[%s7036_s5 + $0xd8] sm:$0xff]  }
 0x754   :  { %v2909_v17 = vpack.c.bf16 %v2411_v15, %v2408_v14  ;;  %v5675_v14 = vld [vmem:[%s7036_s5 + $0xd0] sm:$0xff]   ;;  %v5676_v15 = vld [vmem:[%s7036_s5 + $0x118] sm:$0xff]  }
 0x756   :  { %5347 = vmatpush3.bf16.msra.mxu1 %v2909_v17  ;;  %v5678_v17 = vld [vmem:[%s7036_s5 + $0x120] sm:$0xff]  }
 0x757   :  { %5358 = vmatprep.subr.bf16.mxu1 %v5758_v1 }
 0x759   :  { %5349 = vmatmul.mubr.msk.bf16.vlgmr.msra.gmra.mrb[52].mxu1 %vm954_vm1, %v4436_v18  ;;  %v5679_v18 = vld [vmem:[%s7036_s5 + $0xe0] sm:$0xff]  }
 0x75a   :  { %5360 = vmatprep.mubr.msk.bf16.mxu1 %vm5759_vm0, %v5758_v1 }
 0x76f   :  { %v2633_v20 = vpop.f32.mrb[44].mxu1 }
 0x770   :  { %v2634_v21 = vadd.f32 %v4374_v19, %v2633_v20  ;;  %v5298_v22 = vpop.f32.mrb[45].mxu1  ;;  %v5680_v19 = vld [vmem:[%s7036_s5 + $0x128] sm:$0xff]  }
 0x771   :  { %v2636_v23 = vpop.f32.mrb[46].mxu1  ;;  %v5681_v20 = vld [vmem:[%s7036_s5 + $0xe8] sm:$0xff]   ;;  %v5683_v22 = vld [vmem:[%s7036_s5 + $0xf0] sm:$0xff]  }
 0x772   :  { %v2955_v24 = vpack.c.bf16 %v2634_v21, %v2634_v21  ;;  %v5299_v25 = vpop.f32.mrb[47].mxu1  ;;  %v5682_v21 = vld [vmem:[%s7036_s5 + $0x130] sm:$0xff]   ;;  %v5684_v23 = vld [vmem:[%s7036_s5 + $0x138] sm:$0xff]  }
 0x774   :  { %v2965_v27 = vsel %vm1056_vm2, %v2955_v24, 0  ;;  %v5685_v24 = vld [vmem:[%s7036_s5 + $0xf8] sm:$0xff]  }
 0x775   :  { %5353 = vmatpush3.bf16.msra.mxu0 %v2965_v27 }
 0x776   :  { %4836 = vmatprep.subr.bf16.mxu0 %v5645_v26 }
 0x778   :  { %5355 = vmatmul.mubr.msk.bf16.vlgmr.msra.gmra.mrb[56].mxu0 %vm1052_vm3, %v5644_v28 }
 0x779   :  { %4837 = vmatpush3.bf16.msra.mxu0 %v5646_v29 }
 0x77a   :  { %4838 = vmatprep.subr.bf16.mxu0 %v5647_v30  ;;  %v5686_v30 = vld [vmem:[%s7035_s4 + $0x200] sm:$0xff]  }
 0x77d   :  { %4839 = vmatpush3.bf16.msra.mxu0 %v5648_v31  ;;  %v5687_v31 = vld [vmem:[%s7035_s4 + $0x208] sm:$0xff]  }
 0x77e   :  { %4840 = vmatprep.subr.bf16.mxu0 %v5649_v32 }
 0x781   :  { %4841 = vmatpush3.bf16.msra.mxu0 %v5650_v33 }
 0x782   :  { %4842 = vmatprep.subr.bf16.mxu0 %v5651_v34 }
 0x785   :  { %4843 = vmatpush3.bf16.msra.mxu0 %v5652_v35 }
 0x786   :  { %4844 = vmatprep.subr.bf16.mxu0 %v5653_v37 }
 0x789   :  { %4845 = vmatpush3.bf16.msra.mxu0 %v5654_v38  ;;  %v5689_v38 = vld [vmem:[%s7035_s4 + $0x218] sm:$0xff]  }
 0x78a   :  { %4846 = vmatprep.subr.bf16.mxu0 %v5655_v39  ;;  %v5690_v39 = vld [vmem:[%s7035_s4 + $0x220] sm:$0xff]  }
 0x78d   :  { %4847 = vmatpush3.bf16.msra.mxu0 %v5656_v40  ;;  %v5691_v40 = vld [vmem:[%s7035_s4 + $0x228] sm:$0xff]  }
 0x78e   :  { %4848 = vmatprep.subr.bf16.mxu0 %v5657_v41  ;;  %v5692_v41 = vld [vmem:[%s7035_s4 + $0x230] sm:$0xff]  }
 0x78f   :  { %v2857_v45 = vpop.f32.mrb[48].mxu1 }
 0x790   :  { %v2858_v46 = vadd.f32 %v4426_v42, %v2857_v45  ;;  %v5338_v47 = vpop.f32.mrb[49].mxu1  ;;  %v5693_v42 = vld [vmem:[%s7035_s4 + $0x238] sm:$0xff]  }
 0x791   :  { %v2860_v48 = vpop.f32.mrb[50].mxu1  ;;  %4849 = vmatpush3.bf16.msra.mxu0 %v5658_v43 }
 0x792   :  { %v3010_v50 = vpack.c.bf16 %v2858_v46, %v2858_v46  ;;  %v5339_v51 = vpop.f32.mrb[51].mxu1  ;;  %4850 = vmatprep.subr.bf16.mxu0 %v5659_v44  ;;  %v4462_v48 = vld [vmem:[%s7037_s6 + $0x8] ss:$0 sm:$0xff] }
 0x794   :  { %v3020_v36 = vsel %vm1056_vm2, %v3010_v50, 0 }
 0x795   :  { %5359 = vmatpush3.bf16.msra.mxu1 %v3020_v36  ;;  %4851 = vmatpush3.bf16.msra.mxu0 %v5660_v49 }
 0x796   :  { %5364 = vmatprep.subr.bf16.mxu1 %v5758_v1  ;;  %5384 = vmatprep.subr.bf16.mxu0 %v5758_v1 }
 0x798   :  { %5361 = vmatmul.mubr.msk.bf16.vlgmr.msra.gmra.mrb[56].mxu1 %vm1052_vm3, %v5661_v52 }
 0x799   :  { %5365 = vmatpush3.bf16.msra.mxu1 %v5662_v53  ;;  %5380 = vmatprep.mubr.msk.bf16.mxu1 %vm5759_vm0, %v5758_v1 }
 0x79a   :  { %5366 = vmatprep.subr.bf16.mxu1 %v5758_v1 }
 0x79d   :  { %5367 = vmatpush3.bf16.msra.mxu1 %v5663_v55 }
 0x79e   :  { %5368 = vmatprep.subr.bf16.mxu1 %v5758_v1 }
 0x7a1   :  { %5369 = vmatpush3.bf16.msra.mxu1 %v5664_v56  ;;  %v5694_v56 = vld [vmem:[%s7036_s5 + $0x140] sm:$0xff]  }
 0x7a2   :  { %5370 = vmatprep.subr.bf16.mxu1 %v5758_v1 }
 0x7a5   :  { %5371 = vmatpush3.bf16.msra.mxu1 %v5665_v57 }
 0x7a6   :  { %5372 = vmatprep.subr.bf16.mxu1 %v5758_v1 }
 0x7a9   :  { %5373 = vmatpush3.bf16.msra.mxu1 %v5666_v58  ;;  %v5695_v58 = vld [vmem:[%s7036_s5 + $0x148] sm:$0xff]  }
 0x7aa   :  { %5374 = vmatprep.subr.bf16.mxu1 %v5758_v1 }
 0x7ad   :  { %5375 = vmatpush3.bf16.msra.mxu1 %v5667_v59  ;;  %v5696_v59 = vld [vmem:[%s7036_s5 + $0x150] sm:$0xff]  }
 0x7ae   :  { %5376 = vmatprep.subr.bf16.mxu1 %v5758_v1 }
 0x7b1   :  { %5377 = vmatpush3.bf16.msra.mxu1 %v5668_v60  ;;  %v5697_v60 = vld [vmem:[%s7036_s5 + $0x158] sm:$0xff]  }
 0x7b2   :  { %5378 = vmatprep.subr.bf16.mxu1 %v5758_v1 }
 0x7b5   :  { %5379 = vmatpush3.bf16.msra.mxu1 %v5669_v61  ;;  %v5698_v61 = vld [vmem:[%s7036_s5 + $0x160] sm:$0xff]  }
 0x7b6   :  { %4876 = vmatprep.subr.bf16.mxu1 %v5670_v62  ;;  %v5699_v62 = vld [vmem:[%s7036_s5 + $0x168] sm:$0xff]  }
 0x80c   :  { %v2902_v63 = vpop.f32.mrb[52].mxu0 }
 0x80d   :  { %v3129_v0 = vpack.c.bf16 %v2902_v63, %v2902_v63  ;;  %v5344_v2 = vpop.f32.mrb[53].mxu0  ;;  %v5700_v63 = vld [vmem:[%s7036_s5 + $0x170] sm:$0xff]  }
 0x80e   :  { %v2905_v3 = vpop.f32.mrb[54].mxu0 }
 0x80f   :  { %3313 = vmatprep.mubr.bf16.mxu0 %v3129_v0  ;;  %v5345_v4 = vpop.f32.mrb[55].mxu0  ;;  %v5701_v0 = vld [vmem:[%s7036_s5 + $0x178] sm:$0xff]  }
 0x810   :  { %3314 = vmatmul.mubr.bf16.vlgmr.msra.gmra.mrb[60].mxu0 %v6548_v54  ;;  %v5673_v54 = vld [vmem:[%s7036_s5 + $0xc8] sm:$0xff]  }
 0x811   :  { %5400 = vmatprep.mubr.msk.bf16.mxu0 %vm5759_vm0, %v5758_v1  ;;  %5385 = vmatpush3.bf16.msra.mxu0 %v5686_v30 }
 0x812   :  { %5386 = vmatprep.subr.bf16.mxu0 %v5758_v1 }
 0x815   :  { %5387 = vmatpush3.bf16.msra.mxu0 %v5687_v31 }
 0x816   :  { %5388 = vmatprep.subr.bf16.mxu0 %v5758_v1 }
 0x82c   :  { %v2947_v5 = vpop.f32.mrb[52].mxu1 }
 0x82d   :  { %v3130_v7 = vpack.c.bf16 %v2947_v5, %v2947_v5  ;;  %v5350_v8 = vpop.f32.mrb[53].mxu1 }
 0x82e   :  { %v2950_v10 = vpop.f32.mrb[54].mxu1  ;;  %v5702_v8 = vld [vmem:[%s7035_s4 + $0x240] sm:$0xff]  }
 0x82f   :  { %5381 = vmatmul.mubr.bf16.vlgmr.msra.gmra.mrb[60].mxu1 %v3130_v7  ;;  %v5351_v11 = vpop.f32.mrb[55].mxu1  ;;  %v5704_v10 = vld [vmem:[%s7035_s4 + $0x250] sm:$0xff]  }
 0x830   :  { %4877 = vmatpush3.bf16.msra.mxu1 %v5671_v6  ;;  %v5705_v11 = vld [vmem:[%s7035_s4 + $0x258] sm:$0xff]  }
 0x831   :  { %4878 = vmatprep.subr.bf16.mxu1 %v5672_v9  ;;  %v5703_v9 = vld [vmem:[%s7035_s4 + $0x248] sm:$0xff]  }
 0x834   :  { %4879 = vmatpush3.bf16.msra.mxu1 %v5673_v54  ;;  %v5706_v54 = vld [vmem:[%s7035_s4 + $0x260] sm:$0xff]  }
 0x835   :  { %4880 = vmatprep.subr.bf16.mxu1 %v5674_v13  ;;  %v5707_v13 = vld [vmem:[%s7035_s4 + $0x268] sm:$0xff]  }
 0x838   :  { %4881 = vmatpush3.bf16.msra.mxu1 %v5675_v14  ;;  %v5708_v14 = vld [vmem:[%s7035_s4 + $0x270] sm:$0xff]  }
 0x839   :  { %4882 = vmatprep.subr.bf16.mxu1 %v5676_v15  ;;  %v5709_v15 = vld [vmem:[%s7035_s4 + $0x278] sm:$0xff]  }
 0x83c   :  { %4883 = vmatpush3.bf16.msra.mxu1 %v5677_v16  ;;  %v4487_v16 = vld [vmem:[%s7037_s6 + $0x9] ss:$0 sm:$0xff] }
 0x83d   :  { %4884 = vmatprep.subr.bf16.mxu1 %v5678_v17 }
 0x840   :  { %4885 = vmatpush3.bf16.msra.mxu1 %v5679_v18 }
 0x841   :  { %4886 = vmatprep.subr.bf16.mxu1 %v5680_v19 }
 0x844   :  { %4887 = vmatpush3.bf16.msra.mxu1 %v5681_v20 }
 0x845   :  { %4888 = vmatprep.subr.bf16.mxu1 %v5682_v21 }
 0x848   :  { %4889 = vmatpush3.bf16.msra.mxu1 %v5683_v22  ;;  %v4562_v22 = vld [vmem:[%s7037_s6 + $0xa] ss:$0 sm:$0xff] }
 0x849   :  { %4890 = vmatprep.subr.bf16.mxu1 %v5684_v23 }
 0x84b   :  { %v3001_v25 = vpop.f32.mrb[56].mxu0 }
 0x84c   :  { %v5356_v26 = vpop.f32.mrb[57].mxu0  ;;  %4891 = vmatpush3.bf16.msra.mxu1 %v5685_v24 }
 0x84d   :  { %v3004_v27 = vpop.f32.mrb[58].mxu0  ;;  %5424 = vmatprep.subr.bf16.mxu1 %v5758_v1 }
 0x84e   :  { %v3523_v28 = vpack.c.bf16 %v3004_v27, %v3001_v25  ;;  %v5357_v29 = vpop.f32.mrb[59].mxu0 }
 0x850   :  { %3707 = vmatprep.mubr.bf16.mxu1 %v3523_v28 }
 0x851   :  { %3708 = vmatmul.mubr.bf16.vlgmr.msra.gmra.mrb[64].mxu1 %v6475_v12  ;;  %v5688_v12 = vld [vmem:[%s7035_s4 + $0x210] sm:$0xff]   ;;  %s5760_s4 = smov [#allocation4]  }
 0x852   :  { %5440 = vmatprep.mubr.msk.bf16.mxu1 %vm5759_vm0, %v5758_v1  ;;  %5389 = vmatpush3.bf16.msra.mxu0 %v5688_v12  ;;  %s3877_s24 = sshll.u32 %s5760_s4, 4  ;;  %s3878_s24 = int_to_ptr.vmem [resolvable:$true] %s3877_s24 }
 0x853   :  { %5390 = vmatprep.subr.bf16.mxu0 %v5758_v1  ;;  %5425 = vmatpush3.bf16.msra.mxu1 %v5702_v8  ;;  %s5710_s25 = scalar_lea.vmem %s3878_s24, 256  ;;  %p5715_p1 = scmp.lt.s32.totalorder %s3878_s24, %s3878_s24 }
 0x854   :  { %5426 = vmatprep.subr.bf16.mxu1 %v5758_v1  ;;  %p5711_p0 = scmp.ne.s32.totalorder %s3878_s24, %s5710_s25  ;;  %p5716_p2 = scmp.lt.s32.totalorder %s5710_s25, %s5710_s25 }
 0x856   :  { %5391 = vmatpush3.bf16.msra.mxu0 %v5689_v38  ;;  %p5717_p3 = por %p5716_p2, %p5715_p1 }
 0x857   :  { %5392 = vmatprep.subr.bf16.mxu0 %v5758_v1  ;;  %5427 = vmatpush3.bf16.msra.mxu1 %v5703_v9 }
 0x858   :  { %5428 = vmatprep.subr.bf16.mxu1 %v5758_v1  ;;  %p5718_p4 = pnand %p5717_p3, %p5711_p0 }
 0x85a   :  { %5393 = vmatpush3.bf16.msra.mxu0 %v5690_v39 }
 0x85b   :  { %5394 = vmatprep.subr.bf16.mxu0 %v5758_v1  ;;  %5429 = vmatpush3.bf16.msra.mxu1 %v5704_v10 }
 0x85c   :  { %5430 = vmatprep.subr.bf16.mxu1 %v5758_v1 }
 0x85e   :  { %5395 = vmatpush3.bf16.msra.mxu0 %v5691_v40 }
 0x85f   :  { %5396 = vmatprep.subr.bf16.mxu0 %v5758_v1  ;;  %5431 = vmatpush3.bf16.msra.mxu1 %v5705_v11 }
 0x860   :  { %5432 = vmatprep.subr.bf16.mxu1 %v5758_v1 }
 0x862   :  { %5397 = vmatpush3.bf16.msra.mxu0 %v5692_v41 }
 0x863   :  { %5398 = vmatprep.subr.bf16.mxu0 %v5758_v1  ;;  %5433 = vmatpush3.bf16.msra.mxu1 %v5706_v54 }
 0x864   :  { %5434 = vmatprep.subr.bf16.mxu1 %v5758_v1 }
 0x866   :  { %5399 = vmatpush3.bf16.msra.mxu0 %v5693_v42 }
 0x867   :  { %5404 = vmatprep.subr.bf16.mxu0 %v5758_v1  ;;  %5435 = vmatpush3.bf16.msra.mxu1 %v5707_v13 }
 0x868   :  { %5436 = vmatprep.subr.bf16.mxu1 %v5758_v1 }
 0x86b   :  { %v6891_v32 = vpop.f32.mrb[56].mxu1  ;;  %5437 = vmatpush3.bf16.msra.mxu1 %v5708_v14 }
 0x86c   :  { %v5362_v33 = vpop.f32.mrb[57].mxu1  ;;  %5438 = vmatprep.subr.bf16.mxu1 %v5758_v1 }
 0x86d   :  { %v6896_v34 = vpop.f32.mrb[58].mxu1 }
 0x86e   :  { %v3524_v35 = vpack.c.bf16 %v6896_v34, %v6891_v32  ;;  %v5363_v37 = vpop.f32.mrb[59].mxu1 }
 0x86f   :  { %5439 = vmatpush3.bf16.msra.mxu1 %v5709_v15 }
 0x8e3   :  { %v4852_v43 = vpop.f32.mrb[60].mxu0 }
 0x8e4   :  { %v4853_v44 = vpop.f32.mrb[61].mxu0 }
 0x8e5   :  { %v4854_v45 = vadd.f32 %v4853_v44, %v4852_v43  ;;  %v4855_v46 = vpop.f32.mrb[62].mxu0 }
 0x8e6   :  { %v4856_v47 = vpop.f32.mrb[63].mxu0 }
 0x8e7   :  { %v3316_v49 = vadd.f32 %v4854_v45, %v4462_v48 }
 0x902   :  { %v3355_v50 = vpop.f32.mrb[60].mxu1 }
 0x903   :  { %v3356_v51 = vadd.f32 %v3355_v50, %v3316_v49  ;;  %v5382_v36 = vpop.f32.mrb[61].mxu1 }
 0x904   :  { %v3358_v52 = vpop.f32.mrb[62].mxu1 }
 0x905   :  { %v3361_v53 = vmax.f32 %v3356_v51, 0.0  ;;  %v5383_v55 = vpop.f32.mrb[63].mxu1 }
 0x907   :  { %v3362_v57 = vpack.c.bf16 %v3361_v53, %v3361_v53 }
 0x909   :  { %5401 = vmatmul.mubr.bf16.vlgmr.msra.gmra.mrb[64].mxu0 %v3362_v57 }
 0x90a   :  { %5405 = vmatpush3.bf16.msra.mxu0 %v5694_v56  ;;  %5420 = vmatprep.mubr.msk.bf16.mxu0 %vm5759_vm0, %v5758_v1 }
 0x90b   :  { %5406 = vmatprep.subr.bf16.mxu0 %v5758_v1 }
 0x90e   :  { %5407 = vmatpush3.bf16.msra.mxu0 %v5695_v58 }
 0x90f   :  { %5408 = vmatprep.subr.bf16.mxu0 %v5758_v1 }
 0x912   :  { %5409 = vmatpush3.bf16.msra.mxu0 %v5696_v59 }
 0x913   :  { %5410 = vmatprep.subr.bf16.mxu0 %v5758_v1 }
 0x916   :  { %5411 = vmatpush3.bf16.msra.mxu0 %v5697_v60 }
 0x917   :  { %5412 = vmatprep.subr.bf16.mxu0 %v5758_v1 }
 0x91a   :  { %5413 = vmatpush3.bf16.msra.mxu0 %v5698_v61 }
 0x91b   :  { %5414 = vmatprep.subr.bf16.mxu0 %v5758_v1 }
 0x91e   :  { %5415 = vmatpush3.bf16.msra.mxu0 %v5699_v62 }
 0x91f   :  { %5416 = vmatprep.subr.bf16.mxu0 %v5758_v1 }
 0x922   :  { %5417 = vmatpush3.bf16.msra.mxu0 %v5700_v63 }
 0x923   :  { %5418 = vmatprep.subr.bf16.mxu0 %v5758_v1 }
 0x924   :  { %v4892_v2 = vpop.f32.mrb[64].mxu1 }
 0x925   :  { %v4893_v3 = vpop.f32.mrb[65].mxu1 }
 0x926   :  { %v4894_v4 = vadd.f32 %v4893_v3, %v4892_v2  ;;  %5419 = vmatpush3.bf16.msra.mxu0 %v5701_v0  ;;  %v4895_v5 = vpop.f32.mrb[66].mxu1 }
 0x927   :  { %v4896_v6 = vpop.f32.mrb[67].mxu1 }
 0x928   :  { %v4897_v7 = vadd.f32 %v4896_v6, %v4895_v5  ;;  %v3710_v1 = vadd.f32 %v4894_v4, %v4562_v22 }
 0x929   :  { %5421 = vmatmul.mubr.bf16.vlgmr.msra.gmra.mrb[68].mxu0 %v3524_v35 }
 0x92a   :  { %v3713_v26 = vadd.f32 %v4897_v7, %v4562_v22 }
 0x9dc   :  { %v3451_v17 = vpop.f32.mrb[64].mxu0 }
 0x9dd   :  { %v3452_v18 = vadd.f32 %v4487_v16, %v3451_v17  ;;  %v5402_v19 = vpop.f32.mrb[65].mxu0 }
 0x9de   :  { %v3454_v20 = vpop.f32.mrb[66].mxu0 }
 0x9df   :  { %3859 = vst [vmem:[#allocation4 + $0x8] sm:$0xff] %v3452_v18  ;;  %v5403_v21 = vpop.f32.mrb[67].mxu0 }
 0x9fc   :  { %v3750_v23 = vpop.f32.mrb[68].mxu0 }
 0x9fd   :  { %v3751_v24 = vadd.f32 %v3750_v23, %v3710_v1  ;;  %v5422_v25 = vpop.f32.mrb[69].mxu0 }
 0x9fe   :  { %v3753_v27 = vpop.f32.mrb[70].mxu0 }
 0x9ff   :  { %v3754_v28 = vadd.f32 %v3753_v27, %v3713_v26  ;;  %v5423_v29 = vpop.f32.mrb[71].mxu0  ;;  %v3757_v30 = vmax.f32 %v3751_v24, 0.0 }
 0xa01   :  { %v3758_v31 = vmax.f32 %v3754_v28, 0.0 }
 0xa03   :  { %v3759_v32 = vpack.c.bf16 %v3758_v31, %v3757_v30 }
 0xa05   :  { %5441 = vmatmul.mubr.bf16.vlgmr.msra.gmra.mrb[68].mxu1 %v3759_v32 }
 0xa06   :  { %5721 = shalt.err (!%p5718_p4)
}
 0xa07   :  { %s5722_s28 = scalar_lea.hbm %s7039_s8, 256 }
 0xa08   :  { %p5723_p5 = scmp.ne.s32.totalorder %s7039_s8, %s5722_s28  ;;  %p5726_p6 = scmp.lt.u32.totalorder %s5722_s28, %s7039_s8 }
 0xa0a   :  { %p5728_p7 = pnand %p5726_p6, %p5723_p5 }
 0xa0c   :  { %5731 = shalt.err (!%p5728_p7)
}
 0xa0d   :  { %s5761_s0 = smov 128   ;;  %s5762_s5 = smov 8   ;;  %v4587_v33 = vld [vmem:[%s7037_s6 + $0xb] ss:$0 sm:$0xff] }
 0xa0e   :  { %3883 = dma.vmem_to_hbm [thread:$0]  %s3878_s24, 256, %s7039_s8, [#allocation5], %s5761_s0, %s5761_s0, %s5762_s5  }
 0xa0f   :  { %s5763_s13 = smov [#allocation2]  }
 0xa10   :  { %s3865_s14 = sshll.u32 %s5763_s13, 4  ;;  %s3866_s14 = int_to_ptr.vmem [resolvable:$true] %s3865_s14 }
 0xa11   :  { %s5732_s15 = scalar_lea.vmem %s3866_s14, 512  ;;  %p5737_p9 = scmp.lt.s32.totalorder %s3866_s14, %s3866_s14 }
 0xa12   :  { %p5733_p8 = scmp.ne.s32.totalorder %s3866_s14, %s5732_s15  ;;  %p5738_p10 = scmp.lt.s32.totalorder %s5732_s15, %s5732_s15 }
 0xa14   :  { %p5739_p11 = por %p5738_p10, %p5737_p9 }
 0xa16   :  { %p5740_p12 = pnand %p5739_p11, %p5733_p8 }
 0xad8   :  { %v3848_v12 = vpop.f32.mrb[68].mxu1 }
 0xad9   :  { %v3849_v34 = vadd.f32 %v4587_v33, %v3848_v12  ;;  %v5442_v35 = vpop.f32.mrb[69].mxu1 }
 0xada   :  { %v3851_v37 = vpop.f32.mrb[70].mxu1 }
 0xadb   :  { %3856 = vst [vmem:[#allocation2 + $0x10] sm:$0xff] %v3849_v34  ;;  %v3852_v38 = vadd.f32 %v4587_v33, %v3851_v37  ;;  %v5443_v39 = vpop.f32.mrb[71].mxu1 }
 0xadd   :  { %3857 = vst [vmem:[#allocation2 + $0x18] sm:$0xff] %v3852_v38 }
 0xade   :  { %5743 = shalt.err (!%p5740_p12)
}
 0xadf   :  { %s5744_s16 = scalar_lea.hbm %s7038_s7, 512 }
 0xae0   :  { %p5745_p13 = scmp.ne.s32.totalorder %s7038_s7, %s5744_s16  ;;  %p5748_p0 = scmp.lt.u32.totalorder %s5744_s16, %s7038_s7 }
 0xae2   :  { %p5750_p1 = pnand %p5748_p0, %p5745_p13 }
 0xae4   :  { %5753 = shalt.err (!%p5750_p1)
}
 0xae5   :  { %3871 = dma.vmem_to_hbm [thread:$0]  %s3866_s14, 512, %s7038_s7, [#allocation3], %s5761_s0, %s5761_s0, %s5762_s5  }
 0xae6   :  { %5754 = dma.done.wait [#allocation3], 512  }
 0xae7   :  { %5755 = vsyncadd [#allocation3], 4294966784 }
 0xae8   :  { %5756 = dma.done.wait [#allocation5], 256  }
 0xae9   :  { %5757 = vsyncadd [#allocation5], 4294967040 }
 0xaea   :  { %3890 = vsyncpa [#allocation3], 1 }
 0xaeb   :  { %3891 = vsyncpa [#allocation5], 1 }

</bundles_post_ra>
